<compile_context>
chip_gen: v7x
topology: tpu7x:2x2x1
jax: 0.10.0
libtpu: 0.0.40
codegen_flags: <defaults>
</compile_context>

<pallas_src>
import jax
import jax.numpy as jnp
from jax.experimental import pallas as pl
from jax.experimental.pallas import tpu as pltpu

LANE = 128      # TPU lane width (last-dim tiling granularity)
SUBLANE = 8     # sublane granularity (second-to-last-dim tiling)


def _round_up(x, m):
    return m * ((x + m - 1) // m)


def dqn_mlp_kernel(x_ref, w1_ref, b1_ref, w2_ref, b2_ref, w3_ref, b3_ref, out_ref):
    """One batch tile of the fused 3-layer MLP, entirely in VMEM."""
    # --- Layer 1: K = states_dim is tiny (2 for MountainCar) -> unrolled VPU
    # broadcast-FMA, skipping a near-empty MXU pass.  The bf16->f32 cast of w1
    # is hoisted out of the unroll (single convert, rows sliced from it).
    # NOTE: for envs with states_dim > ~16 this layer should switch to a
    # zero-padded K=128 MXU matmul instead of the serial VPU chain.
    x = x_ref[...].astype(jnp.float32)                      # (TILE_B, states_dim)
    w1f = w1_ref[...].astype(jnp.float32)                   # (states_dim, 128)
    h1 = b1_ref[...].astype(jnp.float32)                    # (1, 128) -> broadcasts
    for k in range(x_ref.shape[1]):                         # static unroll
        h1 = h1 + x[:, k:k + 1] * w1f[k:k + 1, :]
    h1 = jnp.maximum(h1, 0.0)                               # (TILE_B, 128) f32

    # --- Layer 2: 128x128 MXU matmul, bf16 operands, f32 accumulation.
    # Bias-add / ReLU epilogue stays in f32 (v5e VPU has no bf16 datapath).
    h2 = jnp.dot(h1.astype(w2_ref.dtype), w2_ref[...],
                 preferred_element_type=jnp.float32)
    h2 = jnp.maximum(h2 + b2_ref[...].astype(jnp.float32), 0.0)

    # --- Layer 3: lane-dense padded output (128 lanes), f32 accumulation.
    # h2 is fed to the MXU as bf16 => Q-values carry ~1e-2-level relative error
    # vs. a pure-f32 reference.  Fine for action selection; keep in mind if these
    # Q-values are used directly as TD targets.
    out = jnp.dot(h2.astype(w3_ref.dtype), w3_ref[...],
                  preferred_element_type=jnp.float32)
    out = out + b3_ref[...].astype(jnp.float32)
    out_ref[...] = out.astype(out_ref.dtype)


def init_params(key, states_dim, actions_dim, hidden=128):
    """Deterministic synthetic init (PyTorch-style uniform fan_in scaling).
    Weights stored as (in, out) in bf16; biases as (1, out) in f32."""
    def linear(k, fan_in, fan_out):
        k_w, k_b = jax.random.split(k)
        bound = 1.0 / (fan_in ** 0.5)
        w = jax.random.uniform(k_w, (fan_in, fan_out), jnp.float32, -bound, bound)
        b = jax.random.uniform(k_b, (1, fan_out), jnp.float32, -bound, bound)
        return w.astype(jnp.bfloat16), b

    k1, k2, k3 = jax.random.split(key, 3)
    w1, b1 = linear(k1, states_dim, hidden)
    w2, b2 = linear(k2, hidden, hidden)
    w3, b3 = linear(k3, hidden, actions_dim)
    return {"w1": w1, "b1": b1, "w2": w2, "b2": b2, "w3": w3, "b3": b3}


def prepare_params(params):
    """One-time (outside the training loop) lane-padding of the last layer so
    the kernel writes a lane-dense 128-wide block.  Do NOT call per forward."""
    actions_dim = params["w3"].shape[1]
    out_pad = LANE * pl.cdiv(actions_dim, LANE)
    pad = out_pad - actions_dim
    prepped = dict(params)
    if pad:
        prepped["w3"] = jnp.pad(params["w3"], ((0, 0), (0, pad)))
        prepped["b3"] = jnp.pad(params["b3"], ((0, 0), (0, pad)))
    return prepped


def dqn_forward(x, params, actions_dim, *, tile_b=1024,
                out_dtype=jnp.bfloat16, trim=True):
    """Forward pass.

    x:       (B, states_dim) f32
    params:  dict from prepare_params() (w3/b3 already lane-padded)
    trim:    if True return (B, actions_dim); if False return the padded
             (B_pad, 128) block so the consumer can fuse slicing / argmax.
    """
    B, states_dim = x.shape
    hidden = params["w1"].shape[1]
    out_pad = params["w3"].shape[1]          # already a multiple of LANE

    # Adaptive, sublane-aligned batch tile: never exceed the rounded-up batch so
    # small batches (e.g. B=300 -> tile 304) collapse to a single grid step
    # instead of paying a near-empty padded tail tile.
    tile = min(_round_up(max(tile_b, SUBLANE), SUBLANE), _round_up(B, SUBLANE))
    b_padded = tile * pl.cdiv(B, tile)
    x_p = jnp.pad(x, ((0, b_padded - B), (0, 0))) if b_padded != B else x

    grid = (b_padded // tile,)
    out = pl.pallas_call(
        dqn_mlp_kernel,
        out_shape=jax.ShapeDtypeStruct((b_padded, out_pad), out_dtype),
        grid=grid,
        in_specs=[
            pl.BlockSpec((tile, states_dim), lambda i: (i, 0)),   # x: tiled over batch
            pl.BlockSpec((states_dim, hidden), lambda i: (0, 0)),  # w1: VMEM-resident
            pl.BlockSpec((1, hidden), lambda i: (0, 0)),           # b1
            pl.BlockSpec((hidden, hidden), lambda i: (0, 0)),      # w2
            pl.BlockSpec((1, hidden), lambda i: (0, 0)),           # b2
            pl.BlockSpec((hidden, out_pad), lambda i: (0, 0)),     # w3 (pre-padded)
            pl.BlockSpec((1, out_pad), lambda i: (0, 0)),          # b3 (pre-padded)
        ],
        out_specs=pl.BlockSpec((tile, out_pad), lambda i: (i, 0)),
        compiler_params=pltpu.CompilerParams(
            # Shards batch tiles across TCs on v7x when grid > 1; harmless otherwise.
            dimension_semantics=("parallel",),
        ),
    )(x_p, params["w1"], params["b1"], params["w2"], params["b2"],
      params["w3"], params["b3"])

    if not trim:
        # Padded rows (>= B) and padded action columns (>= actions_dim) contain
        # garbage / zero Q-values -- the consumer must index [:B, :actions_dim]
        # (or fuse the argmax over only the real columns).
        return out
    return out[:B, :actions_dim]


def reference_forward(x, p):
    """Pure-JAX f32 reference on the same (bf16-stored, unpadded) parameters."""
    w1 = p["w1"].astype(jnp.float32)
    w2 = p["w2"].astype(jnp.float32)
    w3 = p["w3"].astype(jnp.float32)
    h1 = jnp.maximum(x @ w1 + p["b1"], 0.0)
    h2 = jnp.maximum(h1 @ w2 + p["b2"], 0.0)
    return h2 @ w3 + p["b3"]


if __name__ == "__main__":
    # MountainCar-v0: states_dim=2, actions_dim=3.  Batch of 300 (replay-minibatch
    # scale) exercises the adaptive single-tile path (tile=304, grid=(1,)) and
    # the batch/lane padding + slicing logic.
    states_dim, actions_dim, batch = 2, 3, 300

    key = jax.random.PRNGKey(0)
    k_params, k_x = jax.random.split(key)
    params = init_params(k_params, states_dim, actions_dim)
    prepped = prepare_params(params)          # pad weights ONCE, outside hot loop
    x = jax.random.normal(k_x, (batch, states_dim), jnp.float32)

    # Hot-path style call: padded bf16 block, consumer does the slice/argmax.
    q_padded = dqn_forward(x, prepped, actions_dim, trim=False)
    q_padded = jax.block_until_ready(q_padded)
    assert q_padded.shape[0] >= batch and q_padded.shape[1] == LANE, q_padded.shape

    q = jnp.asarray(q_padded[:batch, :actions_dim], jnp.float32)
    ref = reference_forward(x, params)
    assert q.shape == (batch, actions_dim), q.shape
    # bf16 activation casts + bf16 output vs. a pure-f32 reference -> loose tol.
    assert jnp.allclose(q, ref, atol=5e-2, rtol=5e-2), "mismatch vs reference"

    # Convenience trimmed path (returns (B, actions_dim) directly).
    q_trim = dqn_forward(x, prepped, actions_dim)
    q_trim = jax.block_until_ready(q_trim)
    assert q_trim.shape == (batch, actions_dim), q_trim.shape
    assert jnp.allclose(jnp.asarray(q_trim, jnp.float32), ref, atol=5e-2, rtol=5e-2)

    print("KERNEL_OK")
</pallas_src>

<mosaic_0001>
module attributes {stable_mosaic.version = 11 : i64} {
  func.func @dqn_mlp_kernel(%arg0: i32, %arg1: memref<304x2xf32, #tpu.memory_space<vmem>>, %arg2: memref<2x128xbf16, #tpu.memory_space<vmem>>, %arg3: memref<1x128xf32, #tpu.memory_space<vmem>>, %arg4: memref<128x128xbf16, #tpu.memory_space<vmem>>, %arg5: memref<1x128xf32, #tpu.memory_space<vmem>>, %arg6: memref<128x128xbf16, #tpu.memory_space<vmem>>, %arg7: memref<1x128xf32, #tpu.memory_space<vmem>>, %arg8: memref<304x128xbf16, #tpu.memory_space<vmem>>) attributes {dimension_semantics = [#tpu.dimension_semantics<parallel>], iteration_bounds = array<i64: 1>, scalar_prefetch = 0 : i64, scratch_operands = 0 : i64, tpu.core_type = #tpu.core_type<tc>, window_params = [{transform_indices = @transform_0, window_bounds = array<i64: 304, 2>}, {pipeline_mode = #tpu.pipeline_mode<synchronous>, transform_indices = @transform_1, window_bounds = array<i64: 2, 128>}, {pipeline_mode = #tpu.pipeline_mode<synchronous>, transform_indices = @transform_2, window_bounds = array<i64: 1, 128>}, {pipeline_mode = #tpu.pipeline_mode<synchronous>, transform_indices = @transform_3, window_bounds = array<i64: 128, 128>}, {pipeline_mode = #tpu.pipeline_mode<synchronous>, transform_indices = @transform_4, window_bounds = array<i64: 1, 128>}, {pipeline_mode = #tpu.pipeline_mode<synchronous>, transform_indices = @transform_5, window_bounds = array<i64: 128, 128>}, {pipeline_mode = #tpu.pipeline_mode<synchronous>, transform_indices = @transform_6, window_bounds = array<i64: 1, 128>}, {transform_indices = @transform_7, window_bounds = array<i64: 304, 128>}]} {
    %c0 = arith.constant 0 : index
    %c0_0 = arith.constant 0 : index
    %0 = vector.load %arg1[%c0, %c0_0] : memref<304x2xf32, #tpu.memory_space<vmem>>, vector<304x2xf32>
    %c0_1 = arith.constant 0 : index
    %c0_2 = arith.constant 0 : index
    %1 = vector.load %arg2[%c0_1, %c0_2] : memref<2x128xbf16, #tpu.memory_space<vmem>>, vector<2x128xbf16>
    %2 = arith.extf %1 : vector<2x128xbf16> to vector<2x128xf32>
    %c0_3 = arith.constant 0 : index
    %c0_4 = arith.constant 0 : index
    %3 = vector.load %arg3[%c0_3, %c0_4] : memref<1x128xf32, #tpu.memory_space<vmem>>, vector<1x128xf32>
    %4 = vector.extract_strided_slice %0 {offsets = [0, 0], sizes = [304, 1], strides = [1, 1]} : vector<304x2xf32> to vector<304x1xf32>
    %5 = vector.extract_strided_slice %2 {offsets = [0, 0], sizes = [1, 128], strides = [1, 1]} : vector<2x128xf32> to vector<1x128xf32>
    %6 = vector.broadcast %4 : vector<304x1xf32> to vector<304x128xf32>
    %7 = vector.broadcast %5 : vector<1x128xf32> to vector<304x128xf32>
    %8 = arith.mulf %6, %7 : vector<304x128xf32>
    %9 = vector.broadcast %3 : vector<1x128xf32> to vector<304x128xf32>
    %10 = arith.addf %9, %8 : vector<304x128xf32>
    %11 = vector.extract_strided_slice %0 {offsets = [0, 1], sizes = [304, 1], strides = [1, 1]} : vector<304x2xf32> to vector<304x1xf32>
    %12 = vector.extract_strided_slice %2 {offsets = [1, 0], sizes = [1, 128], strides = [1, 1]} : vector<2x128xf32> to vector<1x128xf32>
    %13 = vector.broadcast %11 : vector<304x1xf32> to vector<304x128xf32>
    %14 = vector.broadcast %12 : vector<1x128xf32> to vector<304x128xf32>
    %15 = arith.mulf %13, %14 : vector<304x128xf32>
    %16 = arith.addf %10, %15 : vector<304x128xf32>
    %cst = arith.constant 0.000000e+00 : f32
    %17 = vector.broadcast %cst : f32 to vector<304x128xf32>
    %18 = arith.maximumf %16, %17 : vector<304x128xf32>
    %19 = arith.truncf %18 : vector<304x128xf32> to vector<304x128xbf16>
    %c0_5 = arith.constant 0 : index
    %c0_6 = arith.constant 0 : index
    %20 = vector.load %arg4[%c0_5, %c0_6] : memref<128x128xbf16, #tpu.memory_space<vmem>>, vector<128x128xbf16>
    %cst_7 = arith.constant dense<0.000000e+00> : vector<304x128xf32>
    %21 = tpu.matmul %19, %20, %cst_7 {dimension_numbers = #tpu.dot_dimension_numbers<[1], [0], [0], [1], [0, 0, 1, 1], [], []>} : vector<304x128xbf16>, vector<128x128xbf16>, vector<304x128xf32> -> vector<304x128xf32>
    %c0_8 = arith.constant 0 : index
    %c0_9 = arith.constant 0 : index
    %22 = vector.load %arg5[%c0_8, %c0_9] : memref<1x128xf32, #tpu.memory_space<vmem>>, vector<1x128xf32>
    %23 = vector.broadcast %22 : vector<1x128xf32> to vector<304x128xf32>
    %24 = arith.addf %21, %23 : vector<304x128xf32>
    %cst_10 = arith.constant 0.000000e+00 : f32
    %25 = vector.broadcast %cst_10 : f32 to vector<304x128xf32>
    %26 = arith.maximumf %24, %25 : vector<304x128xf32>
    %27 = arith.truncf %26 : vector<304x128xf32> to vector<304x128xbf16>
    %c0_11 = arith.constant 0 : index
    %c0_12 = arith.constant 0 : index
    %28 = vector.load %arg6[%c0_11, %c0_12] : memref<128x128xbf16, #tpu.memory_space<vmem>>, vector<128x128xbf16>
    %cst_13 = arith.constant dense<0.000000e+00> : vector<304x128xf32>
    %29 = tpu.matmul %27, %28, %cst_13 {dimension_numbers = #tpu.dot_dimension_numbers<[1], [0], [0], [1], [0, 0, 1, 1], [], []>} : vector<304x128xbf16>, vector<128x128xbf16>, vector<304x128xf32> -> vector<304x128xf32>
    %c0_14 = arith.constant 0 : index
    %c0_15 = arith.constant 0 : index
    %30 = vector.load %arg7[%c0_14, %c0_15] : memref<1x128xf32, #tpu.memory_space<vmem>>, vector<1x128xf32>
    %31 = vector.broadcast %30 : vector<1x128xf32> to vector<304x128xf32>
    %32 = arith.addf %29, %31 : vector<304x128xf32>
    %33 = arith.truncf %32 : vector<304x128xf32> to vector<304x128xbf16>
    %c0_16 = arith.constant 0 : index
    %c0_17 = arith.constant 0 : index
    %34 = vector.load %arg8[%c0_16, %c0_17] : memref<304x128xbf16, #tpu.memory_space<vmem>>, vector<304x128xbf16>
    tpu.vector_store %arg8[%c0_16, %c0_17], %33 {strides = array<i32>} : memref<304x128xbf16, #tpu.memory_space<vmem>>, vector<304x128xbf16>,
    return
  }
  func.func @transform_0(%arg0: i32) -> (i32, i32) {
    %c0_i32 = arith.constant 0 : i32
    %c0_i32_0 = arith.constant 0 : i32
    return %arg0, %c0_i32 : i32, i32
  }
  func.func @transform_1(%arg0: i32) -> (i32, i32) {
    %c0_i32 = arith.constant 0 : i32
    %c0_i32_0 = arith.constant 0 : i32
    %c0_i32_1 = arith.constant 0 : i32
    return %c0_i32, %c0_i32_0 : i32, i32
  }
  func.func @transform_2(%arg0: i32) -> (i32, i32) {
    %c0_i32 = arith.constant 0 : i32
    %c0_i32_0 = arith.constant 0 : i32
    %c0_i32_1 = arith.constant 0 : i32
    return %c0_i32, %c0_i32_0 : i32, i32
  }
  func.func @transform_3(%arg0: i32) -> (i32, i32) {
    %c0_i32 = arith.constant 0 : i32
    %c0_i32_0 = arith.constant 0 : i32
    %c0_i32_1 = arith.constant 0 : i32
    return %c0_i32, %c0_i32_0 : i32, i32
  }
  func.func @transform_4(%arg0: i32) -> (i32, i32) {
    %c0_i32 = arith.constant 0 : i32
    %c0_i32_0 = arith.constant 0 : i32
    %c0_i32_1 = arith.constant 0 : i32
    return %c0_i32, %c0_i32_0 : i32, i32
  }
  func.func @transform_5(%arg0: i32) -> (i32, i32) {
    %c0_i32 = arith.constant 0 : i32
    %c0_i32_0 = arith.constant 0 : i32
    %c0_i32_1 = arith.constant 0 : i32
    return %c0_i32, %c0_i32_0 : i32, i32
  }
  func.func @transform_6(%arg0: i32) -> (i32, i32) {
    %c0_i32 = arith.constant 0 : i32
    %c0_i32_0 = arith.constant 0 : i32
    %c0_i32_1 = arith.constant 0 : i32
    return %c0_i32, %c0_i32_0 : i32, i32
  }
  func.func @transform_7(%arg0: i32) -> (i32, i32) {
    %c0_i32 = arith.constant 0 : i32
    %c0_i32_0 = arith.constant 0 : i32
    return %arg0, %c0_i32 : i32, i32
  }
}

</mosaic_0001>

<bundles_post_ra>
// kernel: tpu_custom_call.1
= control target key start
LH: loop header
LB: loop body
LE: loop exit
PB: predicated region body
PF: predicated region fallthrough
CT: control target
= control target key end

     0   :  { %v1952_v2 = vmov 1   ;;  %v1953_v4 = vmov 0.0   ;;  %v1954_v5 = vmov 0   ;;  %vm1955_vm0 = vmmov 0   ;;  %s2543_s0 = inlined_call_operand.vmem [shape: f32[304,2], index: 0, kind: input, shape index: {}]   ;;  %s2544_s1 = inlined_call_operand.vmem [shape: bf16[2,128], index: 1, kind: input, shape index: {}]   ;;  %s2545_s2 = inlined_call_operand.vmem [shape: f32[1,128], index: 2, kind: input, shape index: {}]   ;;  %s2546_s3 = inlined_call_operand.vmem [shape: bf16[128,128], index: 3, kind: input, shape index: {}]   ;;  %s2547_s4 = inlined_call_operand.vmem [shape: f32[1,128], index: 4, kind: input, shape index: {}]   ;;  %s2548_s5 = inlined_call_operand.vmem [shape: bf16[128,128], index: 5, kind: input, shape index: {}]   ;;  %s2549_s6 = inlined_call_operand.vmem [shape: f32[1,128], index: 6, kind: input, shape index: {}]   ;;  %s2550_s7 = inlined_call_operand.hbm [shape: bf16[304,128], index: 7, kind: output, shape index: {}]  }
   0x1   :  { %v30_v0 = vld [vmem:[%s2543_s0 + $0x10] sm:$0xff]  ;;  %v28_v1 = vld [vmem:[%s2543_s0] sm:$0xff]  ;;  %1864 = vset.pattern.permute.xlu0 %v1952_v2  ;;  %1862 = vset.pattern.permute.xlu1 %v1952_v2  ;;  %v29_v3 = vld [vmem:[%s2543_s0 + $0x8] sm:$0xff] }
   0x2   :  { %354 = vperm.xlu0 %1864, %v30_v0   ;;  %346 = vperm.xlu1 %1862, %v28_v1   ;;  %v1912_v6 = vld [vmem:[%s2546_s3] sm:$0xff]   ;;  %v31_v7 = vld [vmem:[%s2543_s0 + $0x18] sm:$0xff]  ;;  %v1913_v8 = vld [vmem:[%s2546_s3 + $0x8] sm:$0xff]  }
   0x3   :  { %1671 = vmatprep.subr.bf16.mxu0 %v1953_v4  ;;  %1763 = vmatprep.subr.bf16.mxu1 %v1953_v4  ;;  %v1914_v9 = vld [vmem:[%s2546_s3 + $0x10] sm:$0xff]   ;;  %v32_v10 = vld [vmem:[%s2543_s0 + $0x20] sm:$0xff]  ;;  %v33_v11 = vld [vmem:[%s2543_s0 + $0x28] sm:$0xff] }
   0x4   :  { %1672 = vmatpush3.bf16.msra.mxu0 %v1912_v6  ;;  %v1915_v12 = vld [vmem:[%s2546_s3 + $0x18] sm:$0xff]   ;;  %v34_v13 = vld [vmem:[%s2543_s0 + $0x30] sm:$0xff]  ;;  %v1916_v14 = vld [vmem:[%s2546_s3 + $0x20] sm:$0xff]   ;;  %1687 = vmatprep.mubr.msk.bf16.mxu0 %vm1955_vm0, %v1953_v4 }
   0x5   :  { %1673 = vmatprep.subr.bf16.mxu0 %v1953_v4  ;;  %1779 = vmatprep.mubr.msk.bf16.mxu1 %vm1955_vm0, %v1953_v4 }
   0x6   :  { %1865 = vset.pattern.permute.xlu0 %v1954_v5  ;;  %350 = vperm.xlu1 %1862, %v29_v3  }
   0x7   :  { %71 = vperm.xlu0 %1865, %v28_v1  }
   0x8   :  { %1674 = vmatpush3.bf16.msra.mxu0 %v1913_v8 }
   0x9   :  { %1675 = vmatprep.subr.bf16.mxu0 %v1953_v4 }
   0xa   :  { %1863 = vset.pattern.permute.xlu1 %v1954_v5 }
   0xb   :  { %76 = vperm.xlu0 %1865, %v29_v3   ;;  %86 = vperm.xlu1 %1863, %v31_v7  }
   0xc   :  { %1676 = vmatpush3.bf16.msra.mxu0 %v1914_v9 }
   0xd   :  { %1677 = vmatprep.subr.bf16.mxu0 %v1953_v4 }
   0xf   :  { %81 = vperm.xlu0 %1865, %v30_v0   ;;  %1866 = vset.pattern.permute.xlu1 %v1952_v2 }
  0x10   :  { %358 = vperm.xlu1 %1866, %v31_v7   ;;  %1678 = vmatpush3.bf16.msra.mxu0 %v1915_v12 }
  0x11   :  { %1679 = vmatprep.subr.bf16.mxu0 %v1953_v4 }
  0x13   :  { %96 = vperm.xlu0 %1865, %v33_v11  }
  0x14   :  { %1867 = vset.pattern.permute.xlu1 %v1954_v5 }
  0x15   :  { %91 = vperm.xlu1 %1867, %v32_v10  }
  0x17   :  { %101 = vperm.xlu0 %1865, %v34_v13  }
  0x18   :  { %12 = vsyncpa [#allocation3], 0  ;;  %1680 = vmatpush3.bf16.msra.mxu0 %v1916_v14  ;;  %v1917_v15 = vld [vmem:[%s2546_s3 + $0x28] sm:$0xff]   ;;  %v38_v16 = vld [vmem:[%s2543_s0 + $0x50] sm:$0xff]  ;;  %v259_v40 = vlaneseq }
  0x19   :  { %1868 = vset.pattern.permute.xlu1 %v1952_v2  ;;  %1681 = vmatprep.subr.bf16.mxu0 %v1953_v4  ;;  %v1918_v17 = vld [vmem:[%s2546_s3 + $0x30] sm:$0xff]   ;;  %v35_v18 = vld [vmem:[%s2543_s0 + $0x38] sm:$0xff]  ;;  %v37_v20 = vld [vmem:[%s2543_s0 + $0x48] sm:$0xff] }
  0x1a   :  { %362 = vperm.xlu1 %1868, %v32_v10   ;;  %v1919_v19 = vld [vmem:[%s2546_s3 + $0x38] sm:$0xff]   ;;  %v36_v21 = vld [vmem:[%s2543_s0 + $0x40] sm:$0xff]  ;;  %v41_v22 = vld [vmem:[%s2543_s0 + $0x68] sm:$0xff]  ;;  %v260_v42 = vshrl.u32 %v259_v40, 7 }
  0x1b   :  { %1870 = vset.pattern.permute.xlu0 %v1952_v2  ;;  %v42_v23 = vld [vmem:[%s2543_s0 + $0x70] sm:$0xff]  ;;  %v39_v25 = vld [vmem:[%s2543_s0 + $0x58] sm:$0xff]  ;;  %v45_v26 = vld [vmem:[%s2543_s0 + $0x88] sm:$0xff] }
  0x1c   :  { %370 = vperm.xlu0 %1870, %v34_v13   ;;  %1682 = vmatpush3.bf16.msra.mxu0 %v1917_v15  ;;  %v46_v24 = vld [vmem:[%s2543_s0 + $0x90] sm:$0xff]  ;;  %v40_v27 = vld [vmem:[%s2543_s0 + $0x60] sm:$0xff]  ;;  %v49_v28 = vld [vmem:[%s2543_s0 + $0xa8] sm:$0xff]  ;;  %v261_v44 = vsub.s32 0, %v260_v42  ;;  %v499_v49 = vsub.s32 1, %v260_v42 }
  0x1d   :  { %1683 = vmatprep.subr.bf16.mxu0 %v1953_v4  ;;  %v50_v29 = vld [vmem:[%s2543_s0 + $0xb0] sm:$0xff]  ;;  %v43_v30 = vld [vmem:[%s2543_s0 + $0x78] sm:$0xff]  ;;  %v2123_v32 = vld [vmem:[%s2543_s0 + $0xc8] sm:$0xff] }
  0x1e   :  { %366 = vperm.xlu1 %1868, %v33_v11   ;;  %v54_v31 = vld [vmem:[%s2543_s0 + $0xd0] sm:$0xff]  ;;  %v44_v33 = vld [vmem:[%s2543_s0 + $0x80] sm:$0xff]  ;;  %v2135_v34 = vld [vmem:[%s2543_s0 + $0xe8] sm:$0xff] }
  0x1f   :  { %v58_v35 = vld [vmem:[%s2543_s0 + $0xf0] sm:$0xff]  ;;  %v47_v36 = vld [vmem:[%s2543_s0 + $0x98] sm:$0xff]  ;;  %v2151_v37 = vld [vmem:[%s2543_s0 + $0x108] sm:$0xff] }
  0x20   :  { %386 = vperm.xlu0 %1870, %v38_v16   ;;  %1684 = vmatpush3.bf16.msra.mxu0 %v1918_v17  ;;  %v62_v38 = vld [vmem:[%s2543_s0 + $0x110] sm:$0xff]  ;;  %v48_v39 = vld [vmem:[%s2543_s0 + $0xa0] sm:$0xff]  ;;  %v2167_v41 = vld [vmem:[%s2543_s0 + $0x128] sm:$0xff] }
  0x21   :  { %1685 = vmatprep.subr.bf16.mxu0 %v1953_v4  ;;  %v66_v43 = vld [vmem:[%s2544_s1] sm:$0x1]  ;;  %v51_v45 = vld [vmem:[%s2543_s0 + $0xb8] sm:$0xff] }
  0x22   :  { %1869 = vset.pattern.permute.xlu1 %v1954_v5  ;;  %v67_v46 = vunpack.c.l.bf16 %v66_v43  ;;  %v2184_v52 = vld [vmem:[%s2545_s2] ss:$0 sm:$0xff] }
  0x23   :  { %106 = vperm.xlu1 %1869, %v35_v18   ;;  %v52_v59 = vld [vmem:[%s2543_s0 + $0xc0] sm:$0xff] }
  0x24   :  { %1875 = vset.pattern.permute.xlu0 %v1954_v5  ;;  %1686 = vmatpush3.bf16.msra.mxu0 %v1919_v19  ;;  %v2179_v50 = vrot.slane %v67_v46, %v261_v44  ;;  %v2186_v54 = vrot.slane %v67_v46, %v499_v49  ;;  %v56_v44 = vld [vmem:[%s2543_s0 + $0xe0] sm:$0xff] }
  0x25   :  { %116 = vperm.xlu0 %1875, %v37_v20  }
  0x27   :  { %1871 = vset.pattern.permute.xlu1 %v1952_v2 }
  0x28   :  { %374 = vperm.xlu1 %1871, %v35_v18  }
  0x29   :  { %121 = vperm.xlu0 %1875, %v38_v16  }
  0x2c   :  { %1872 = vset.pattern.permute.xlu1 %v1954_v5 }
  0x2d   :  { %111 = vperm.xlu1 %1872, %v36_v21   ;;  %136 = vperm.xlu0 %1875, %v41_v22  }
  0x31   :  { %1873 = vset.pattern.permute.xlu1 %v1952_v2  ;;  %141 = vperm.xlu0 %1875, %v42_v23  }
  0x32   :  { %378 = vperm.xlu1 %1873, %v36_v21  }
  0x35   :  { %1880 = vset.pattern.permute.xlu0 %v1952_v2 }
  0x36   :  { %382 = vperm.xlu1 %1873, %v37_v20   ;;  %402 = vperm.xlu0 %1880, %v42_v23  }
  0x3a   :  { %1874 = vset.pattern.permute.xlu1 %v1954_v5  ;;  %418 = vperm.xlu0 %1880, %v46_v24  }
  0x3b   :  { %126 = vperm.xlu1 %1874, %v39_v25  }
  0x3e   :  { %1885 = vset.pattern.permute.xlu0 %v1954_v5 }
  0x3f   :  { %1876 = vset.pattern.permute.xlu1 %v1952_v2  ;;  %156 = vperm.xlu0 %1885, %v45_v26  }
  0x40   :  { %390 = vperm.xlu1 %1876, %v39_v25  }
  0x43   :  { %161 = vperm.xlu0 %1885, %v46_v24   ;;  %v55_v24 = vld [vmem:[%s2543_s0 + $0xd8] sm:$0xff] }
  0x44   :  { %1877 = vset.pattern.permute.xlu1 %v1954_v5 }
  0x45   :  { %131 = vperm.xlu1 %1877, %v40_v27  }
  0x47   :  { %176 = vperm.xlu0 %1885, %v49_v28  }
  0x49   :  { %1878 = vset.pattern.permute.xlu1 %v1952_v2 }
  0x4a   :  { %394 = vperm.xlu1 %1878, %v40_v27  }
  0x4b   :  { %181 = vperm.xlu0 %1885, %v50_v29  }
  0x4e   :  { %398 = vperm.xlu1 %1878, %v41_v22  }
  0x4f   :  { %1890 = vset.pattern.permute.xlu0 %v1952_v2 }
  0x50   :  { %434 = vperm.xlu0 %1890, %v50_v29  }
  0x52   :  { %1879 = vset.pattern.permute.xlu1 %v1954_v5 }
  0x53   :  { %146 = vperm.xlu1 %1879, %v43_v30  }
  0x54   :  { %450 = vperm.xlu0 %1890, %v54_v31  }
  0x57   :  { %1881 = vset.pattern.permute.xlu1 %v1952_v2 }
  0x58   :  { %406 = vperm.xlu1 %1881, %v43_v30   ;;  %1895 = vset.pattern.permute.xlu0 %v1954_v5 }
  0x59   :  { %196 = vperm.xlu0 %1895, %v2123_v32  }
  0x5c   :  { %1882 = vset.pattern.permute.xlu1 %v1954_v5 }
  0x5d   :  { %151 = vperm.xlu1 %1882, %v44_v33   ;;  %201 = vperm.xlu0 %1895, %v54_v31  }
  0x61   :  { %1883 = vset.pattern.permute.xlu1 %v1952_v2  ;;  %216 = vperm.xlu0 %1895, %v2135_v34  }
  0x62   :  { %410 = vperm.xlu1 %1883, %v44_v33  }
  0x65   :  { %1900 = vset.pattern.permute.xlu0 %v1952_v2 }
  0x66   :  { %414 = vperm.xlu1 %1883, %v45_v26   ;;  %466 = vperm.xlu0 %1900, %v58_v35  }
  0x6a   :  { %1884 = vset.pattern.permute.xlu1 %v1954_v5  ;;  %1901 = vset.pattern.permute.xlu0 %v1954_v5 }
  0x6b   :  { %166 = vperm.xlu1 %1884, %v47_v36   ;;  %221 = vperm.xlu0 %1901, %v58_v35  }
  0x6f   :  { %1886 = vset.pattern.permute.xlu1 %v1952_v2  ;;  %236 = vperm.xlu0 %1901, %v2151_v37  }
  0x70   :  { %422 = vperm.xlu1 %1886, %v47_v36  }
  0x73   :  { %241 = vperm.xlu0 %1901, %v62_v38  }
  0x74   :  { %1887 = vset.pattern.permute.xlu1 %v1954_v5 }
  0x75   :  { %171 = vperm.xlu1 %1887, %v48_v39  }
  0x77   :  { %1906 = vset.pattern.permute.xlu0 %v1952_v2 }
  0x78   :  { %482 = vperm.xlu0 %1906, %v62_v38  }
  0x79   :  { %1888 = vset.pattern.permute.xlu1 %v1952_v2 }
  0x7a   :  { %426 = vperm.xlu1 %1888, %v48_v39  }
  0x7c   :  { %1909 = vset.pattern.permute.xlu0 %v1954_v5 }
  0x7d   :  { %256 = vperm.xlu0 %1909, %v2167_v41  }
  0x7e   :  { %430 = vperm.xlu1 %1888, %v49_v28  }
  0x81   :  { %v347_v47 = vpop.permute.xlu1 %346  ;;  %v355_v48 = vpop.permute.xlu0 %354  ;;  %1911 = vset.pattern.permute.xlu0 %v1952_v2 }
  0x82   :  { %1889 = vset.pattern.permute.xlu1 %v1954_v5  ;;  %v501_v60 = vmul.f32 %v2186_v54, %v347_v47  ;;  %v503_v6 = vmul.f32 %v2186_v54, %v355_v48 }
  0x83   :  { %186 = vperm.xlu1 %1889, %v51_v45  }
  0x85   :  { %v351_v51 = vpop.permute.xlu1 %350 }
  0x86   :  { %v72_v53 = vpop.permute.xlu0 %71  ;;  %v502_v62 = vmul.f32 %v2186_v54, %v351_v51 }
  0x87   :  { %v263_v55 = vmul.f32 %v2179_v50, %v72_v53  ;;  %1891 = vset.pattern.permute.xlu1 %v1952_v2 }
  0x88   :  { %438 = vperm.xlu1 %1891, %v51_v45  }
  0x89   :  { %v307_v56 = vadd.f32 %v2184_v52, %v263_v55 }
  0x8a   :  { %v77_v57 = vpop.permute.xlu0 %76  ;;  %v87_v58 = vpop.permute.xlu1 %86 }
  0x8b   :  { %v264_v61 = vmul.f32 %v2179_v50, %v77_v57  ;;  %v539_v63 = vadd.f32 %v501_v60, %v307_v56  ;;  %v266_v1 = vmul.f32 %v2179_v50, %v87_v58 }
  0x8c   :  { %1892 = vset.pattern.permute.xlu1 %v1954_v5 }
  0x8d   :  { %v308_v0 = vadd.f32 %v2184_v52, %v264_v61  ;;  %191 = vperm.xlu1 %1892, %v52_v59   ;;  %v577_v11 = vmax.f32 %v539_v63, 0.0  ;;  %v310_v13 = vadd.f32 %v2184_v52, %v266_v1 }
  0x8e   :  { %v82_v3 = vpop.permute.xlu0 %81 }
  0x8f   :  { %v540_v7 = vadd.f32 %v502_v62, %v308_v0  ;;  %v265_v8 = vmul.f32 %v2179_v50, %v82_v3  ;;  %v359_v9 = vpop.permute.xlu1 %358  ;;  %v59_v0 = vld [vmem:[%s2543_s0 + $0xf8] sm:$0xff] }
  0x90   :  { %v504_v10 = vmul.f32 %v2186_v54, %v359_v9 }
  0x91   :  { %v578_v12 = vmax.f32 %v540_v7, 0.0  ;;  %v309_v14 = vadd.f32 %v2184_v52, %v265_v8  ;;  %1893 = vset.pattern.permute.xlu1 %v1952_v2 }
  0x92   :  { %442 = vperm.xlu1 %1893, %v52_v59   ;;  %v542_v16 = vadd.f32 %v504_v10, %v310_v13  ;;  %v97_v19 = vpop.permute.xlu0 %96 }
  0x93   :  { %v541_v15 = vadd.f32 %v503_v6, %v309_v14  ;;  %v615_v17 = vpack.c.bf16 %v578_v12, %v577_v11  ;;  %v268_v23 = vmul.f32 %v2179_v50, %v97_v19 }
  0x94   :  { %v92_v18 = vpop.permute.xlu1 %91  ;;  %v580_v21 = vmax.f32 %v542_v16, 0.0 }
  0x95   :  { %1688 = vmatmul.mubr.bf16.vlgmr.msra.gmra.mrb[0].mxu0 %v615_v17  ;;  %v579_v20 = vmax.f32 %v541_v15, 0.0  ;;  %v267_v22 = vmul.f32 %v2179_v50, %v92_v18  ;;  %v312_v30 = vadd.f32 %v2184_v52, %v268_v23  ;;  %v60_v18 = vld [vmem:[%s2543_s0 + $0x100] sm:$0xff] }
  0x96   :  { %446 = vperm.xlu1 %1893, %v2123_v32   ;;  %1691 = vmatprep.mubr.msk.bf16.mxu0 %vm1955_vm0, %v1953_v4  ;;  %v102_v26 = vpop.permute.xlu0 %101 }
  0x97   :  { %v616_v28 = vpack.c.bf16 %v580_v21, %v579_v20  ;;  %v311_v29 = vadd.f32 %v2184_v52, %v267_v22  ;;  %v269_v35 = vmul.f32 %v2179_v50, %v102_v26 }
  0x99   :  { %v363_v25 = vpop.permute.xlu1 %362  ;;  %v313_v43 = vadd.f32 %v2184_v52, %v269_v35 }
  0x9a   :  { %v505_v27 = vmul.f32 %v2186_v54, %v363_v25  ;;  %1894 = vset.pattern.permute.xlu1 %v1954_v5 }
  0x9b   :  { %206 = vperm.xlu1 %1894, %v55_v24   ;;  %v371_v36 = vpop.permute.xlu0 %370 }
  0x9c   :  { %v543_v32 = vadd.f32 %v505_v27, %v311_v29  ;;  %v507_v45 = vmul.f32 %v2186_v54, %v371_v36 }
  0x9d   :  { %1692 = vmatmul.mubr.bf16.gmra.mrb[4].mxu0 %v616_v28  ;;  %v367_v31 = vpop.permute.xlu1 %366 }
  0x9e   :  { %v506_v33 = vmul.f32 %v2186_v54, %v367_v31  ;;  %1695 = vmatprep.mubr.msk.bf16.mxu0 %vm1955_vm0, %v1953_v4  ;;  %v581_v39 = vmax.f32 %v543_v32, 0.0  ;;  %v545_v48 = vadd.f32 %v507_v45, %v313_v43 }
  0x9f   :  { %1896 = vset.pattern.permute.xlu1 %v1952_v2  ;;  %v387_v51 = vpop.permute.xlu0 %386 }
  0xa0   :  { %v544_v38 = vadd.f32 %v506_v33, %v312_v30  ;;  %454 = vperm.xlu1 %1896, %v55_v24   ;;  %v583_v56 = vmax.f32 %v545_v48, 0.0  ;;  %v511_v13 = vmul.f32 %v2186_v54, %v387_v51  ;;  %v63_v33 = vld [vmem:[%s2543_s0 + $0x118] sm:$0xff] }
  0xa2   :  { %v582_v40 = vmax.f32 %v544_v38, 0.0  ;;  %v107_v42 = vpop.permute.xlu1 %106 }
  0xa3   :  { %v270_v46 = vmul.f32 %v2179_v50, %v107_v42 }
  0xa4   :  { %1897 = vset.pattern.permute.xlu1 %v1954_v5  ;;  %v617_v47 = vpack.c.bf16 %v582_v40, %v581_v39  ;;  %v117_v60 = vpop.permute.xlu0 %116 }
  0xa5   :  { %211 = vperm.xlu1 %1897, %v56_v44   ;;  %v314_v53 = vadd.f32 %v2184_v52, %v270_v46  ;;  %v272_v63 = vmul.f32 %v2179_v50, %v117_v60 }
  0xa6   :  { %1696 = vmatmul.mubr.bf16.gmra.mrb[8].mxu0 %v617_v47  ;;  %v1920_v47 = vld [vmem:[%s2548_s5] sm:$0xff]  }
  0xa7   :  { %v375_v49 = vpop.permute.xlu1 %374  ;;  %1699 = vmatprep.mubr.msk.bf16.mxu0 %vm1955_vm0, %v1953_v4  ;;  %v316_v7 = vadd.f32 %v2184_v52, %v272_v63  ;;  %1764 = vmatpush3.bf16.msra.mxu1 %v1920_v47 }
  0xa8   :  { %v508_v55 = vmul.f32 %v2186_v54, %v375_v49  ;;  %1765 = vmatprep.subr.bf16.mxu1 %v1953_v4 }
  0xa9   :  { %1898 = vset.pattern.permute.xlu1 %v1952_v2 }
  0xaa   :  { %v546_v57 = vadd.f32 %v508_v55, %v314_v53  ;;  %458 = vperm.xlu1 %1898, %v56_v44   ;;  %v64_v55 = vld [vmem:[%s2543_s0 + $0x120] sm:$0xff] }
  0xac   :  { %v584_v58 = vmax.f32 %v546_v57, 0.0  ;;  %v112_v59 = vpop.permute.xlu1 %111 }
  0xad   :  { %v271_v62 = vmul.f32 %v2179_v50, %v112_v59  ;;  %v1921_v59 = vld [vmem:[%s2548_s5 + $0x8] sm:$0xff]  }
  0xae   :  { %462 = vperm.xlu1 %1898, %v2135_v34   ;;  %v618_v61 = vpack.c.bf16 %v584_v58, %v583_v56  ;;  %v122_v34 = vpop.permute.xlu0 %121  ;;  %1766 = vmatpush3.bf16.msra.mxu1 %v1921_v59 }
  0xaf   :  { %v315_v6 = vadd.f32 %v2184_v52, %v271_v62  ;;  %v273_v11 = vmul.f32 %v2179_v50, %v122_v34  ;;  %1767 = vmatprep.subr.bf16.mxu1 %v1953_v4 }
  0xb0   :  { %1700 = vmatmul.mubr.bf16.gmra.mrb[12].mxu0 %v618_v61 }
  0xb1   :  { %v379_v1 = vpop.permute.xlu1 %378  ;;  %1703 = vmatprep.mubr.msk.bf16.mxu0 %vm1955_vm0, %v1953_v4  ;;  %v317_v17 = vadd.f32 %v2184_v52, %v273_v11  ;;  %v1924_v11 = vld [vmem:[%s2548_s5 + $0x20] sm:$0xff]  }
  0xb2   :  { %v509_v3 = vmul.f32 %v2186_v54, %v379_v1  ;;  %1899 = vset.pattern.permute.xlu1 %v1954_v5  ;;  %v137_v29 = vpop.permute.xlu0 %136 }
  0xb3   :  { %226 = vperm.xlu1 %1899, %v59_v0   ;;  %v549_v21 = vadd.f32 %v511_v13, %v317_v17  ;;  %v276_v32 = vmul.f32 %v2179_v50, %v137_v29 }
  0xb4   :  { %v547_v9 = vadd.f32 %v509_v3, %v315_v6 }
  0xb5   :  { %v383_v8 = vpop.permute.xlu1 %382  ;;  %v587_v25 = vmax.f32 %v549_v21, 0.0  ;;  %v320_v39 = vadd.f32 %v2184_v52, %v276_v32 }
  0xb6   :  { %v510_v10 = vmul.f32 %v2186_v54, %v383_v8  ;;  %v585_v14 = vmax.f32 %v547_v9, 0.0  ;;  %v142_v36 = vpop.permute.xlu0 %141 }
  0xb7   :  { %1902 = vset.pattern.permute.xlu1 %v1952_v2  ;;  %v277_v44 = vmul.f32 %v2179_v50, %v142_v36 }
  0xb8   :  { %v548_v12 = vadd.f32 %v510_v10, %v316_v7  ;;  %470 = vperm.xlu1 %1902, %v59_v0   ;;  %v1922_v0 = vld [vmem:[%s2548_s5 + $0x10] sm:$0xff]   ;;  %v1923_v7 = vld [vmem:[%s2548_s5 + $0x18] sm:$0xff]  }
  0xb9   :  { %v321_v53 = vadd.f32 %v2184_v52, %v277_v44  ;;  %1768 = vmatpush3.bf16.msra.mxu1 %v1922_v0 }
  0xba   :  { %v586_v15 = vmax.f32 %v548_v12, 0.0  ;;  %v127_v16 = vpop.permute.xlu1 %126  ;;  %v403_v45 = vpop.permute.xlu0 %402  ;;  %1769 = vmatprep.subr.bf16.mxu1 %v1953_v4 }
  0xbb   :  { %v274_v19 = vmul.f32 %v2179_v50, %v127_v16  ;;  %v515_v56 = vmul.f32 %v2186_v54, %v403_v45  ;;  %v1925_v16 = vld [vmem:[%s2548_s5 + $0x28] sm:$0xff]  }
  0xbc   :  { %1903 = vset.pattern.permute.xlu1 %v1954_v5  ;;  %v619_v20 = vpack.c.bf16 %v586_v15, %v585_v14 }
  0xbd   :  { %231 = vperm.xlu1 %1903, %v60_v18   ;;  %v318_v23 = vadd.f32 %v2184_v52, %v274_v19  ;;  %v553_v60 = vadd.f32 %v515_v56, %v321_v53  ;;  %1770 = vmatpush3.bf16.msra.mxu1 %v1923_v7 }
  0xbe   :  { %1704 = vmatmul.mubr.bf16.gmra.mrb[16].mxu0 %v619_v20  ;;  %v419_v62 = vpop.permute.xlu0 %418  ;;  %1771 = vmatprep.subr.bf16.mxu1 %v1953_v4 }
  0xbf   :  { %v391_v22 = vpop.permute.xlu1 %390  ;;  %1707 = vmatprep.mubr.msk.bf16.mxu0 %vm1955_vm0, %v1953_v4  ;;  %v591_v1 = vmax.f32 %v553_v60, 0.0 }
  0xc0   :  { %v512_v24 = vmul.f32 %v2186_v54, %v391_v22  ;;  %v1926_v22 = vld [vmem:[%s2548_s5 + $0x30] sm:$0xff]  }
  0xc1   :  { %1904 = vset.pattern.permute.xlu1 %v1952_v2  ;;  %1772 = vmatpush3.bf16.msra.mxu1 %v1924_v11 }
  0xc2   :  { %v550_v26 = vadd.f32 %v512_v24, %v318_v23  ;;  %474 = vperm.xlu1 %1904, %v60_v18   ;;  %v157_v8 = vpop.permute.xlu0 %156  ;;  %1773 = vmatprep.subr.bf16.mxu1 %v1953_v4  ;;  %v519_v23 = vmul.f32 %v2186_v54, %v419_v62 }
  0xc3   :  { %v280_v10 = vmul.f32 %v2179_v50, %v157_v8 }
  0xc4   :  { %v588_v27 = vmax.f32 %v550_v26, 0.0  ;;  %v132_v28 = vpop.permute.xlu1 %131 }
  0xc5   :  { %v275_v31 = vmul.f32 %v2179_v50, %v132_v28  ;;  %v324_v15 = vadd.f32 %v2184_v52, %v280_v10  ;;  %1774 = vmatpush3.bf16.msra.mxu1 %v1925_v16 }
  0xc6   :  { %478 = vperm.xlu1 %1904, %v2151_v37   ;;  %v620_v30 = vpack.c.bf16 %v588_v27, %v587_v25  ;;  %1775 = vmatprep.subr.bf16.mxu1 %v1953_v4 }
  0xc7   :  { %v319_v37 = vadd.f32 %v2184_v52, %v275_v31 }
  0xc8   :  { %1708 = vmatmul.mubr.bf16.gmra.mrb[20].mxu0 %v620_v30  ;;  %v1927_v30 = vld [vmem:[%s2548_s5 + $0x38] sm:$0xff]  }
  0xc9   :  { %v395_v35 = vpop.permute.xlu1 %394  ;;  %1711 = vmatprep.mubr.msk.bf16.mxu0 %vm1955_vm0, %v1953_v4  ;;  %1776 = vmatpush3.bf16.msra.mxu1 %v1926_v22 }
  0xca   :  { %v513_v38 = vmul.f32 %v2186_v54, %v395_v35  ;;  %1905 = vset.pattern.permute.xlu1 %v1954_v5  ;;  %1777 = vmatprep.subr.bf16.mxu1 %v1953_v4 }
  0xcb   :  { %246 = vperm.xlu1 %1905, %v63_v33  }
  0xcc   :  { %v551_v42 = vadd.f32 %v513_v38, %v319_v37 }
  0xcd   :  { %v399_v40 = vpop.permute.xlu1 %398  ;;  %1778 = vmatpush3.bf16.msra.mxu1 %v1927_v30 }
  0xce   :  { %v514_v43 = vmul.f32 %v2186_v54, %v399_v40  ;;  %v589_v48 = vmax.f32 %v551_v42, 0.0 }
  0xcf   :  { %1907 = vset.pattern.permute.xlu1 %v1952_v2 }
  0xd0   :  { %v552_v46 = vadd.f32 %v514_v43, %v320_v39  ;;  %486 = vperm.xlu1 %1907, %v63_v33  }
  0xd2   :  { %v590_v49 = vmax.f32 %v552_v46, 0.0  ;;  %v147_v51 = vpop.permute.xlu1 %146 }
  0xd3   :  { %v278_v57 = vmul.f32 %v2179_v50, %v147_v51 }
  0xd4   :  { %1908 = vset.pattern.permute.xlu1 %v1954_v5  ;;  %v621_v58 = vpack.c.bf16 %v590_v49, %v589_v48 }
  0xd5   :  { %251 = vperm.xlu1 %1908, %v64_v55   ;;  %v322_v63 = vadd.f32 %v2184_v52, %v278_v57 }
  0xd6   :  { %1712 = vmatmul.mubr.bf16.gmra.mrb[24].mxu0 %v621_v58 }
  0xd7   :  { %v407_v61 = vpop.permute.xlu1 %406  ;;  %1715 = vmatprep.mubr.msk.bf16.mxu0 %vm1955_vm0, %v1953_v4 }
  0xd8   :  { %v516_v5 = vmul.f32 %v2186_v54, %v407_v61 }
  0xd9   :  { %1910 = vset.pattern.permute.xlu1 %v1952_v2 }
  0xda   :  { %v554_v3 = vadd.f32 %v516_v5, %v322_v63  ;;  %490 = vperm.xlu1 %1910, %v64_v55  }
  0xdc   :  { %v592_v34 = vmax.f32 %v554_v3, 0.0  ;;  %v152_v6 = vpop.permute.xlu1 %151 }
  0xdd   :  { %v279_v2 = vmul.f32 %v2179_v50, %v152_v6 }
  0xde   :  { %494 = vperm.xlu1 %1910, %v2167_v41   ;;  %v622_v9 = vpack.c.bf16 %v592_v34, %v591_v1  ;;  %v162_v41 = vpop.permute.xlu0 %161 }
  0xdf   :  { %v323_v14 = vadd.f32 %v2184_v52, %v279_v2  ;;  %v281_v20 = vmul.f32 %v2179_v50, %v162_v41 }
  0xe0   :  { %1716 = vmatmul.mubr.bf16.gmra.mrb[28].mxu0 %v622_v9 }
  0xe1   :  { %v411_v12 = vpop.permute.xlu1 %410  ;;  %1719 = vmatprep.mubr.msk.bf16.mxu0 %vm1955_vm0, %v1953_v4  ;;  %v325_v27 = vadd.f32 %v2184_v52, %v281_v20 }
  0xe2   :  { %v517_v13 = vmul.f32 %v2186_v54, %v411_v12  ;;  %v177_v40 = vpop.permute.xlu0 %176 }
  0xe3   :  { %v557_v31 = vadd.f32 %v519_v23, %v325_v27  ;;  %v284_v44 = vmul.f32 %v2179_v50, %v177_v40 }
  0xe4   :  { %v555_v18 = vadd.f32 %v517_v13, %v323_v14 }
  0xe5   :  { %v415_v17 = vpop.permute.xlu1 %414  ;;  %v595_v36 = vmax.f32 %v557_v31, 0.0  ;;  %v328_v49 = vadd.f32 %v2184_v52, %v284_v44 }
  0xe6   :  { %v518_v19 = vmul.f32 %v2186_v54, %v415_v17  ;;  %v593_v24 = vmax.f32 %v555_v18, 0.0  ;;  %v182_v46 = vpop.permute.xlu0 %181 }
  0xe7   :  { %v285_v56 = vmul.f32 %v2179_v50, %v182_v46 }
  0xe8   :  { %v556_v21 = vadd.f32 %v518_v19, %v324_v15 }
  0xe9   :  { %v329_v62 = vadd.f32 %v2184_v52, %v285_v56 }
  0xea   :  { %v594_v25 = vmax.f32 %v556_v21, 0.0  ;;  %v167_v26 = vpop.permute.xlu1 %166  ;;  %v435_v57 = vpop.permute.xlu0 %434 }
  0xeb   :  { %v282_v28 = vmul.f32 %v2179_v50, %v167_v26  ;;  %v523_v63 = vmul.f32 %v2186_v54, %v435_v57 }
  0xec   :  { %v623_v29 = vpack.c.bf16 %v594_v25, %v593_v24 }
  0xed   :  { %v326_v33 = vadd.f32 %v2184_v52, %v282_v28  ;;  %v561_v1 = vadd.f32 %v523_v63, %v329_v62 }
  0xee   :  { %1720 = vmatmul.mubr.bf16.gmra.mrb[32].mxu0 %v623_v29  ;;  %v451_v34 = vpop.permute.xlu0 %450 }
  0xef   :  { %v423_v32 = vpop.permute.xlu1 %422  ;;  %1723 = vmatprep.mubr.msk.bf16.mxu0 %vm1955_vm0, %v1953_v4  ;;  %v599_v8 = vmax.f32 %v561_v1, 0.0  ;;  %v527_v24 = vmul.f32 %v2186_v54, %v451_v34 }
  0xf0   :  { %v520_v35 = vmul.f32 %v2186_v54, %v423_v32 }
  0xf2   :  { %v558_v38 = vadd.f32 %v520_v35, %v326_v33  ;;  %v197_v11 = vpop.permute.xlu0 %196 }
  0xf3   :  { %v288_v41 = vmul.f32 %v2179_v50, %v197_v11 }
  0xf4   :  { %v596_v37 = vmax.f32 %v558_v38, 0.0  ;;  %v172_v39 = vpop.permute.xlu1 %171 }
  0xf5   :  { %v283_v43 = vmul.f32 %v2179_v50, %v172_v39  ;;  %v332_v18 = vadd.f32 %v2184_v52, %v288_v41 }
  0xf6   :  { %v624_v42 = vpack.c.bf16 %v596_v37, %v595_v36  ;;  %v202_v16 = vpop.permute.xlu0 %201 }
  0xf7   :  { %v327_v48 = vadd.f32 %v2184_v52, %v283_v43  ;;  %v289_v22 = vmul.f32 %v2179_v50, %v202_v16 }
  0xf8   :  { %1724 = vmatmul.mubr.bf16.gmra.mrb[36].mxu0 %v624_v42 }
  0xf9   :  { %v427_v45 = vpop.permute.xlu1 %426  ;;  %1727 = vmatprep.mubr.msk.bf16.mxu0 %vm1955_vm0, %v1953_v4  ;;  %v333_v28 = vadd.f32 %v2184_v52, %v289_v22 }
  0xfa   :  { %v521_v47 = vmul.f32 %v2186_v54, %v427_v45  ;;  %v217_v36 = vpop.permute.xlu0 %216 }
  0xfb   :  { %v565_v31 = vadd.f32 %v527_v24, %v333_v28  ;;  %v292_v45 = vmul.f32 %v2179_v50, %v217_v36 }
  0xfc   :  { %v559_v53 = vadd.f32 %v521_v47, %v327_v48 }
  0xfd   :  { %v431_v51 = vpop.permute.xlu1 %430  ;;  %v603_v38 = vmax.f32 %v565_v31, 0.0 }
  0xfe   :  { %v522_v55 = vmul.f32 %v2186_v54, %v431_v51  ;;  %v597_v59 = vmax.f32 %v559_v53, 0.0  ;;  %v467_v42 = vpop.permute.xlu0 %466  ;;  %v336_v51 = vadd.f32 %v2184_v52, %v292_v45 }
 0x100   :  { %v560_v58 = vadd.f32 %v522_v55, %v328_v49 }
 0x102   :  { %v598_v60 = vmax.f32 %v560_v58, 0.0  ;;  %v187_v61 = vpop.permute.xlu1 %186  ;;  %v222_v48 = vpop.permute.xlu0 %221 }
 0x103   :  { %v286_v5 = vmul.f32 %v2179_v50, %v187_v61  ;;  %v293_v57 = vmul.f32 %v2179_v50, %v222_v48  ;;  %v531_v61 = vmul.f32 %v2186_v54, %v467_v42 }
 0x104   :  { %v625_v0 = vpack.c.bf16 %v598_v60, %v597_v59 }
 0x105   :  { %v330_v6 = vadd.f32 %v2184_v52, %v286_v5  ;;  %v337_v63 = vadd.f32 %v2184_v52, %v293_v57 }
 0x106   :  { %1728 = vmatmul.mubr.bf16.gmra.mrb[40].mxu0 %v625_v0 }
 0x107   :  { %v439_v3 = vpop.permute.xlu1 %438  ;;  %1731 = vmatprep.mubr.msk.bf16.mxu0 %vm1955_vm0, %v1953_v4  ;;  %v569_v1 = vadd.f32 %v531_v61, %v337_v63 }
 0x108   :  { %v524_v7 = vmul.f32 %v2186_v54, %v439_v3 }
 0x10a   :  { %v562_v9 = vadd.f32 %v524_v7, %v330_v6  ;;  %v607_v7 = vmax.f32 %v569_v1, 0.0 }
 0x10c   :  { %v600_v2 = vmax.f32 %v562_v9, 0.0  ;;  %v192_v10 = vpop.permute.xlu1 %191 }
 0x10d   :  { %v287_v13 = vmul.f32 %v2179_v50, %v192_v10  ;;  %v237_v10 = vpop.permute.xlu0 %236 }
 0x10e   :  { %v626_v12 = vpack.c.bf16 %v600_v2, %v599_v8 }
 0x10f   :  { %v331_v17 = vadd.f32 %v2184_v52, %v287_v13  ;;  %v296_v13 = vmul.f32 %v2179_v50, %v237_v10 }
 0x110   :  { %1732 = vmatmul.mubr.bf16.gmra.mrb[44].mxu0 %v626_v12 }
 0x111   :  { %v443_v14 = vpop.permute.xlu1 %442  ;;  %1735 = vmatprep.mubr.msk.bf16.mxu0 %vm1955_vm0, %v1953_v4 }
 0x112   :  { %v525_v15 = vmul.f32 %v2186_v54, %v443_v14 }
 0x114   :  { %v563_v20 = vadd.f32 %v525_v15, %v331_v17  ;;  %v242_v15 = vpop.permute.xlu0 %241  ;;  %v340_v17 = vadd.f32 %v2184_v52, %v296_v13 }
 0x115   :  { %v447_v19 = vpop.permute.xlu1 %446 }
 0x116   :  { %v526_v21 = vmul.f32 %v2186_v54, %v447_v19  ;;  %v601_v25 = vmax.f32 %v563_v20, 0.0 }
 0x118   :  { %v564_v23 = vadd.f32 %v526_v21, %v332_v18  ;;  %v297_v21 = vmul.f32 %v2179_v50, %v242_v15 }
 0x11a   :  { %v602_v26 = vmax.f32 %v564_v23, 0.0  ;;  %v207_v27 = vpop.permute.xlu1 %206  ;;  %v483_v23 = vpop.permute.xlu0 %482 }
 0x11b   :  { %v290_v29 = vmul.f32 %v2179_v50, %v207_v27  ;;  %v341_v27 = vadd.f32 %v2184_v52, %v297_v21  ;;  %v535_v28 = vmul.f32 %v2186_v54, %v483_v23 }
 0x11c   :  { %v627_v30 = vpack.c.bf16 %v602_v26, %v601_v25 }
 0x11d   :  { %v334_v33 = vadd.f32 %v2184_v52, %v290_v29 }
 0x11e   :  { %1736 = vmatmul.mubr.bf16.gmra.mrb[48].mxu0 %v627_v30 }
 0x11f   :  { %v455_v32 = vpop.permute.xlu1 %454  ;;  %1739 = vmatprep.mubr.msk.bf16.mxu0 %vm1955_vm0, %v1953_v4 }
 0x120   :  { %v528_v35 = vmul.f32 %v2186_v54, %v455_v32  ;;  %v573_v32 = vadd.f32 %v535_v28, %v341_v27 }
 0x122   :  { %v566_v37 = vadd.f32 %v528_v35, %v334_v33 }
 0x124   :  { %v604_v39 = vmax.f32 %v566_v37, 0.0  ;;  %v212_v40 = vpop.permute.xlu1 %211 }
 0x125   :  { %v291_v44 = vmul.f32 %v2179_v50, %v212_v40  ;;  %v257_v40 = vpop.permute.xlu0 %256 }
 0x126   :  { %v628_v43 = vpack.c.bf16 %v604_v39, %v603_v38  ;;  %v611_v38 = vmax.f32 %v573_v32, 0.0 }
 0x127   :  { %v335_v49 = vadd.f32 %v2184_v52, %v291_v44  ;;  %v300_v44 = vmul.f32 %v2179_v50, %v257_v40 }
 0x128   :  { %1740 = vmatmul.mubr.bf16.gmra.mrb[52].mxu0 %v628_v43 }
 0x129   :  { %v459_v46 = vpop.permute.xlu1 %458  ;;  %1743 = vmatprep.mubr.msk.bf16.mxu0 %vm1955_vm0, %v1953_v4  ;;  %v344_v48 = vadd.f32 %v2184_v52, %v300_v44 }
 0x12a   :  { %v529_v47 = vmul.f32 %v2186_v54, %v459_v46 }
 0x12c   :  { %v567_v55 = vadd.f32 %v529_v47, %v335_v49 }
 0x12d   :  { %v463_v53 = vpop.permute.xlu1 %462 }
 0x12e   :  { %v530_v56 = vmul.f32 %v2186_v54, %v463_v53  ;;  %v605_v59 = vmax.f32 %v567_v55, 0.0 }
 0x130   :  { %v568_v58 = vadd.f32 %v530_v56, %v336_v51 }
 0x132   :  { %v606_v60 = vmax.f32 %v568_v58, 0.0  ;;  %v227_v62 = vpop.permute.xlu1 %226 }
 0x133   :  { %v294_v5 = vmul.f32 %v2179_v50, %v227_v62 }
 0x134   :  { %v629_v0 = vpack.c.bf16 %v606_v60, %v605_v59 }
 0x135   :  { %v338_v34 = vadd.f32 %v2184_v52, %v294_v5 }
 0x136   :  { %1744 = vmatmul.mubr.bf16.gmra.mrb[56].mxu0 %v629_v0 }
 0x137   :  { %v471_v3 = vpop.permute.xlu1 %470  ;;  %1747 = vmatprep.mubr.msk.bf16.mxu0 %vm1955_vm0, %v1953_v4 }
 0x138   :  { %v532_v6 = vmul.f32 %v2186_v54, %v471_v3 }
 0x13a   :  { %v570_v8 = vadd.f32 %v532_v6, %v338_v34 }
 0x13c   :  { %v608_v9 = vmax.f32 %v570_v8, 0.0  ;;  %v232_v2 = vpop.permute.xlu1 %231 }
 0x13d   :  { %v295_v12 = vmul.f32 %v2179_v50, %v232_v2 }
 0x13e   :  { %v630_v11 = vpack.c.bf16 %v608_v9, %v607_v7 }
 0x13f   :  { %v339_v16 = vadd.f32 %v2184_v52, %v295_v12 }
 0x140   :  { %1748 = vmatmul.mubr.bf16.gmra.mrb[60].mxu0 %v630_v11 }
 0x141   :  { %v475_v41 = vpop.permute.xlu1 %474  ;;  %1751 = vmatprep.mubr.msk.bf16.mxu0 %vm1955_vm0, %v1953_v4 }
 0x142   :  { %v533_v14 = vmul.f32 %v2186_v54, %v475_v41 }
 0x144   :  { %v571_v19 = vadd.f32 %v533_v14, %v339_v16 }
 0x145   :  { %v479_v18 = vpop.permute.xlu1 %478 }
 0x146   :  { %v534_v20 = vmul.f32 %v2186_v54, %v479_v18  ;;  %v609_v24 = vmax.f32 %v571_v19, 0.0 }
 0x148   :  { %v572_v22 = vadd.f32 %v534_v20, %v340_v17 }
 0x14a   :  { %v610_v25 = vmax.f32 %v572_v22, 0.0  ;;  %v247_v26 = vpop.permute.xlu1 %246 }
 0x14b   :  { %v298_v29 = vmul.f32 %v2179_v50, %v247_v26 }
 0x14c   :  { %v631_v30 = vpack.c.bf16 %v610_v25, %v609_v24 }
 0x14d   :  { %v342_v33 = vadd.f32 %v2184_v52, %v298_v29 }
 0x14e   :  { %1752 = vmatmul.mubr.bf16.gmra.mrb[64].mxu0 %v631_v30 }
 0x14f   :  { %v487_v31 = vpop.permute.xlu1 %486  ;;  %1755 = vmatprep.mubr.msk.bf16.mxu0 %vm1955_vm0, %v1953_v4 }
 0x150   :  { %v536_v35 = vmul.f32 %v2186_v54, %v487_v31 }
 0x152   :  { %v574_v36 = vadd.f32 %v536_v35, %v342_v33 }
 0x154   :  { %v612_v37 = vmax.f32 %v574_v36, 0.0  ;;  %v252_v39 = vpop.permute.xlu1 %251 }
 0x155   :  { %v299_v43 = vmul.f32 %v2179_v50, %v252_v39  ;;  %v2412_v50 = vld [vmem:[%s2547_s4] ss:$0 sm:$0xff] }
 0x156   :  { %v632_v42 = vpack.c.bf16 %v612_v37, %v611_v38 }
 0x157   :  { %v343_v47 = vadd.f32 %v2184_v52, %v299_v43 }
 0x158   :  { %1756 = vmatmul.mubr.bf16.gmra.mrb[68].mxu0 %v632_v42 }
 0x159   :  { %v491_v45 = vpop.permute.xlu1 %490  ;;  %1759 = vmatprep.mubr.msk.bf16.mxu0 %vm1955_vm0, %v1953_v4 }
 0x15a   :  { %v537_v46 = vmul.f32 %v2186_v54, %v491_v45 }
 0x15c   :  { %v575_v51 = vadd.f32 %v537_v46, %v343_v47 }
 0x15d   :  { %v495_v49 = vpop.permute.xlu1 %494 }
 0x15e   :  { %v538_v53 = vmul.f32 %v2186_v54, %v495_v49  ;;  %v613_v56 = vmax.f32 %v575_v51, 0.0 }
 0x160   :  { %v576_v55 = vadd.f32 %v538_v53, %v344_v48 }
 0x162   :  { %v614_v57 = vmax.f32 %v576_v55, 0.0 }
 0x164   :  { %v633_v58 = vpack.c.bf16 %v614_v57, %v613_v56 }
 0x166   :  { %1760 = vmatmul.mubr.bf16.gmra.mrb[72].mxu0 %v633_v58 }
 0x168   :  { %v739_v59 = vpop.f32.mrb[0].mxu0 }
 0x169   :  { %v740_v60 = vadd.f32 %v2412_v50, %v739_v59  ;;  %v1689_v61 = vpop.f32.mrb[1].mxu0 }
 0x16a   :  { %v742_v62 = vpop.f32.mrb[2].mxu0 }
 0x16b   :  { %v743_v52 = vadd.f32 %v2412_v50, %v742_v62  ;;  %v1690_v63 = vpop.f32.mrb[3].mxu0  ;;  %v890_v5 = vmax.f32 %v740_v60, 0.0 }
 0x16d   :  { %v891_v54 = vmax.f32 %v743_v52, 0.0 }
 0x16f   :  { %v928_v0 = vpack.c.bf16 %v891_v54, %v890_v5 }
 0x170   :  { %v747_v1 = vpop.f32.mrb[4].mxu0 }
 0x171   :  { %v748_v3 = vadd.f32 %v2412_v50, %v747_v1  ;;  %v1693_v34 = vpop.f32.mrb[5].mxu0  ;;  %1780 = vmatmul.mubr.bf16.vlgmr.msra.gmra.mrb[0].mxu1 %v928_v0 }
 0x172   :  { %v750_v6 = vpop.f32.mrb[6].mxu0  ;;  %1783 = vmatprep.mubr.msk.bf16.mxu1 %vm1955_vm0, %v1953_v4 }
 0x173   :  { %v751_v7 = vadd.f32 %v2412_v50, %v750_v6  ;;  %v1694_v8 = vpop.f32.mrb[7].mxu0  ;;  %v892_v9 = vmax.f32 %v748_v3, 0.0 }
 0x175   :  { %v893_v2 = vmax.f32 %v751_v7, 0.0 }
 0x177   :  { %v929_v10 = vpack.c.bf16 %v893_v2, %v892_v9 }
 0x179   :  { %v755_v11 = vpop.f32.mrb[8].mxu0  ;;  %1784 = vmatmul.mubr.bf16.gmra.mrb[4].mxu1 %v929_v10 }
 0x17a   :  { %v756_v12 = vadd.f32 %v2412_v50, %v755_v11  ;;  %v1697_v13 = vpop.f32.mrb[9].mxu0  ;;  %1787 = vmatprep.mubr.msk.bf16.mxu1 %vm1955_vm0, %v1953_v4 }
 0x17b   :  { %v758_v41 = vpop.f32.mrb[10].mxu0 }
 0x17c   :  { %v759_v14 = vadd.f32 %v2412_v50, %v758_v41  ;;  %v1698_v15 = vpop.f32.mrb[11].mxu0  ;;  %v894_v16 = vmax.f32 %v756_v12, 0.0 }
 0x17e   :  { %v895_v17 = vmax.f32 %v759_v14, 0.0 }
 0x180   :  { %v930_v18 = vpack.c.bf16 %v895_v17, %v894_v16 }
 0x182   :  { %1788 = vmatmul.mubr.bf16.gmra.mrb[8].mxu1 %v930_v18 }
 0x183   :  { %v763_v19 = vpop.f32.mrb[12].mxu0  ;;  %1791 = vmatprep.mubr.msk.bf16.mxu1 %vm1955_vm0, %v1953_v4 }
 0x184   :  { %v764_v20 = vadd.f32 %v2412_v50, %v763_v19  ;;  %v1701_v21 = vpop.f32.mrb[13].mxu0 }
 0x185   :  { %v766_v22 = vpop.f32.mrb[14].mxu0 }
 0x186   :  { %v767_v23 = vadd.f32 %v2412_v50, %v766_v22  ;;  %v1702_v24 = vpop.f32.mrb[15].mxu0  ;;  %v896_v25 = vmax.f32 %v764_v20, 0.0 }
 0x188   :  { %v897_v26 = vmax.f32 %v767_v23, 0.0 }
 0x18a   :  { %v931_v27 = vpack.c.bf16 %v897_v26, %v896_v25 }
 0x18c   :  { %1792 = vmatmul.mubr.bf16.gmra.mrb[12].mxu1 %v931_v27 }
 0x18d   :  { %1795 = vmatprep.mubr.msk.bf16.mxu1 %vm1955_vm0, %v1953_v4 }
 0x191   :  { %v771_v28 = vpop.f32.mrb[16].mxu0 }
 0x192   :  { %v772_v29 = vadd.f32 %v2412_v50, %v771_v28  ;;  %v1705_v30 = vpop.f32.mrb[17].mxu0 }
 0x193   :  { %v774_v31 = vpop.f32.mrb[18].mxu0 }
 0x194   :  { %v775_v32 = vadd.f32 %v2412_v50, %v774_v31  ;;  %v1706_v33 = vpop.f32.mrb[19].mxu0  ;;  %v898_v35 = vmax.f32 %v772_v29, 0.0 }
 0x196   :  { %v899_v36 = vmax.f32 %v775_v32, 0.0 }
 0x198   :  { %v932_v38 = vpack.c.bf16 %v899_v36, %v898_v35 }
 0x19a   :  { %1796 = vmatmul.mubr.bf16.gmra.mrb[16].mxu1 %v932_v38 }
 0x19b   :  { %v779_v37 = vpop.f32.mrb[20].mxu0  ;;  %1799 = vmatprep.mubr.msk.bf16.mxu1 %vm1955_vm0, %v1953_v4 }
 0x19c   :  { %v780_v39 = vadd.f32 %v2412_v50, %v779_v37  ;;  %v1709_v40 = vpop.f32.mrb[21].mxu0 }
 0x19d   :  { %v782_v42 = vpop.f32.mrb[22].mxu0 }
 0x19e   :  { %v783_v43 = vadd.f32 %v2412_v50, %v782_v42  ;;  %v1710_v44 = vpop.f32.mrb[23].mxu0  ;;  %v900_v45 = vmax.f32 %v780_v39, 0.0 }
 0x1a0   :  { %v901_v46 = vmax.f32 %v783_v43, 0.0 }
 0x1a2   :  { %v933_v47 = vpack.c.bf16 %v901_v46, %v900_v45 }
 0x1a4   :  { %1800 = vmatmul.mubr.bf16.gmra.mrb[20].mxu1 %v933_v47 }
 0x1a5   :  { %1803 = vmatprep.mubr.msk.bf16.mxu1 %vm1955_vm0, %v1953_v4 }
 0x1a9   :  { %v787_v48 = vpop.f32.mrb[24].mxu0 }
 0x1aa   :  { %v788_v49 = vadd.f32 %v2412_v50, %v787_v48  ;;  %v1713_v51 = vpop.f32.mrb[25].mxu0 }
 0x1ab   :  { %v790_v53 = vpop.f32.mrb[26].mxu0 }
 0x1ac   :  { %v791_v55 = vadd.f32 %v2412_v50, %v790_v53  ;;  %v1714_v56 = vpop.f32.mrb[27].mxu0  ;;  %v902_v57 = vmax.f32 %v788_v49, 0.0 }
 0x1ae   :  { %v903_v58 = vmax.f32 %v791_v55, 0.0 }
 0x1b0   :  { %v934_v59 = vpack.c.bf16 %v903_v58, %v902_v57 }
 0x1b2   :  { %1804 = vmatmul.mubr.bf16.gmra.mrb[24].mxu1 %v934_v59 }
 0x1b3   :  { %v795_v60 = vpop.f32.mrb[28].mxu0  ;;  %1807 = vmatprep.mubr.msk.bf16.mxu1 %vm1955_vm0, %v1953_v4 }
 0x1b4   :  { %v796_v61 = vadd.f32 %v2412_v50, %v795_v60  ;;  %v1717_v62 = vpop.f32.mrb[29].mxu0 }
 0x1b5   :  { %v798_v52 = vpop.f32.mrb[30].mxu0 }
 0x1b6   :  { %v799_v63 = vadd.f32 %v2412_v50, %v798_v52  ;;  %v1718_v5 = vpop.f32.mrb[31].mxu0  ;;  %v904_v54 = vmax.f32 %v796_v61, 0.0 }
 0x1b8   :  { %v905_v0 = vmax.f32 %v799_v63, 0.0 }
 0x1ba   :  { %v935_v1 = vpack.c.bf16 %v905_v0, %v904_v54 }
 0x1bc   :  { %1808 = vmatmul.mubr.bf16.gmra.mrb[28].mxu1 %v935_v1 }
 0x1bd   :  { %1811 = vmatprep.mubr.msk.bf16.mxu1 %vm1955_vm0, %v1953_v4 }
 0x1c1   :  { %v803_v3 = vpop.f32.mrb[32].mxu0 }
 0x1c2   :  { %v804_v34 = vadd.f32 %v2412_v50, %v803_v3  ;;  %v1721_v6 = vpop.f32.mrb[33].mxu0 }
 0x1c3   :  { %v806_v7 = vpop.f32.mrb[34].mxu0 }
 0x1c4   :  { %v807_v8 = vadd.f32 %v2412_v50, %v806_v7  ;;  %v1722_v9 = vpop.f32.mrb[35].mxu0  ;;  %v906_v2 = vmax.f32 %v804_v34, 0.0 }
 0x1c6   :  { %v907_v10 = vmax.f32 %v807_v8, 0.0 }
 0x1c8   :  { %v936_v11 = vpack.c.bf16 %v907_v10, %v906_v2 }
 0x1ca   :  { %1812 = vmatmul.mubr.bf16.gmra.mrb[32].mxu1 %v936_v11 }
 0x1cb   :  { %v811_v12 = vpop.f32.mrb[36].mxu0  ;;  %1815 = vmatprep.mubr.msk.bf16.mxu1 %vm1955_vm0, %v1953_v4 }
 0x1cc   :  { %v812_v13 = vadd.f32 %v2412_v50, %v811_v12  ;;  %v1725_v41 = vpop.f32.mrb[37].mxu0 }
 0x1cd   :  { %v814_v14 = vpop.f32.mrb[38].mxu0 }
 0x1ce   :  { %v815_v15 = vadd.f32 %v2412_v50, %v814_v14  ;;  %v1726_v16 = vpop.f32.mrb[39].mxu0  ;;  %v908_v17 = vmax.f32 %v812_v13, 0.0 }
 0x1d0   :  { %v909_v18 = vmax.f32 %v815_v15, 0.0 }
 0x1d2   :  { %v937_v19 = vpack.c.bf16 %v909_v18, %v908_v17 }
 0x1d4   :  { %1816 = vmatmul.mubr.bf16.gmra.mrb[36].mxu1 %v937_v19 }
 0x1d5   :  { %1819 = vmatprep.mubr.msk.bf16.mxu1 %vm1955_vm0, %v1953_v4 }
 0x1d9   :  { %v819_v20 = vpop.f32.mrb[40].mxu0 }
 0x1da   :  { %v820_v21 = vadd.f32 %v2412_v50, %v819_v20  ;;  %v1729_v22 = vpop.f32.mrb[41].mxu0 }
 0x1db   :  { %v822_v23 = vpop.f32.mrb[42].mxu0 }
 0x1dc   :  { %v823_v24 = vadd.f32 %v2412_v50, %v822_v23  ;;  %v1730_v25 = vpop.f32.mrb[43].mxu0  ;;  %v910_v26 = vmax.f32 %v820_v21, 0.0 }
 0x1de   :  { %v911_v27 = vmax.f32 %v823_v24, 0.0 }
 0x1e0   :  { %v938_v28 = vpack.c.bf16 %v911_v27, %v910_v26 }
 0x1e2   :  { %1820 = vmatmul.mubr.bf16.gmra.mrb[40].mxu1 %v938_v28 }
 0x1e3   :  { %v827_v29 = vpop.f32.mrb[44].mxu0  ;;  %1823 = vmatprep.mubr.msk.bf16.mxu1 %vm1955_vm0, %v1953_v4 }
 0x1e4   :  { %v828_v30 = vadd.f32 %v2412_v50, %v827_v29  ;;  %v1733_v31 = vpop.f32.mrb[45].mxu0 }
 0x1e5   :  { %v830_v32 = vpop.f32.mrb[46].mxu0 }
 0x1e6   :  { %v831_v33 = vadd.f32 %v2412_v50, %v830_v32  ;;  %v1734_v35 = vpop.f32.mrb[47].mxu0  ;;  %v912_v36 = vmax.f32 %v828_v30, 0.0 }
 0x1e8   :  { %v913_v38 = vmax.f32 %v831_v33, 0.0 }
 0x1ea   :  { %v939_v37 = vpack.c.bf16 %v913_v38, %v912_v36 }
 0x1ec   :  { %1824 = vmatmul.mubr.bf16.gmra.mrb[44].mxu1 %v939_v37 }
 0x1ed   :  { %1827 = vmatprep.mubr.msk.bf16.mxu1 %vm1955_vm0, %v1953_v4 }
 0x1f1   :  { %v835_v39 = vpop.f32.mrb[48].mxu0 }
 0x1f2   :  { %v836_v40 = vadd.f32 %v2412_v50, %v835_v39  ;;  %v1737_v42 = vpop.f32.mrb[49].mxu0 }
 0x1f3   :  { %v838_v43 = vpop.f32.mrb[50].mxu0 }
 0x1f4   :  { %v839_v44 = vadd.f32 %v2412_v50, %v838_v43  ;;  %v1738_v45 = vpop.f32.mrb[51].mxu0  ;;  %v914_v46 = vmax.f32 %v836_v40, 0.0  ;;  %v2491_v40 = vld [vmem:[%s2549_s6] ss:$0 sm:$0xff]  ;;  %s1956_s6 = smov [#allocation2]  }
 0x1f5   :  { %s1398_s15 = sshll.u32 %s1956_s6, 4  ;;  %s1399_s15 = int_to_ptr.vmem [resolvable:$true] %s1398_s15 }
 0x1f6   :  { %v915_v47 = vmax.f32 %v839_v44, 0.0  ;;  %s1928_s3 = scalar_lea.vmem %s1399_s15, 2432  ;;  %p1933_p1 = scmp.lt.s32.totalorder %s1399_s15, %s1399_s15 }
 0x1f7   :  { %p1929_p0 = scmp.ne.s32.totalorder %s1399_s15, %s1928_s3  ;;  %p1934_p2 = scmp.lt.s32.totalorder %s1928_s3, %s1928_s3 }
 0x1f8   :  { %v940_v48 = vpack.c.bf16 %v915_v47, %v914_v46 }
 0x1f9   :  { %p1935_p3 = por %p1934_p2, %p1933_p1 }
 0x1fa   :  { %1828 = vmatmul.mubr.bf16.gmra.mrb[48].mxu1 %v940_v48 }
 0x1fb   :  { %v843_v49 = vpop.f32.mrb[52].mxu0  ;;  %1831 = vmatprep.mubr.msk.bf16.mxu1 %vm1955_vm0, %v1953_v4  ;;  %p1936_p4 = pnand %p1935_p3, %p1929_p0 }
 0x1fc   :  { %v844_v51 = vadd.f32 %v2412_v50, %v843_v49  ;;  %v1741_v53 = vpop.f32.mrb[53].mxu0 }
 0x1fd   :  { %v846_v55 = vpop.f32.mrb[54].mxu0 }
 0x1fe   :  { %v847_v56 = vadd.f32 %v2412_v50, %v846_v55  ;;  %v1742_v57 = vpop.f32.mrb[55].mxu0  ;;  %v916_v58 = vmax.f32 %v844_v51, 0.0 }
 0x200   :  { %v917_v59 = vmax.f32 %v847_v56, 0.0 }
 0x202   :  { %v941_v60 = vpack.c.bf16 %v917_v59, %v916_v58 }
 0x204   :  { %1832 = vmatmul.mubr.bf16.gmra.mrb[52].mxu1 %v941_v60 }
 0x205   :  { %1835 = vmatprep.mubr.msk.bf16.mxu1 %vm1955_vm0, %v1953_v4 }
 0x209   :  { %v851_v61 = vpop.f32.mrb[56].mxu0 }
 0x20a   :  { %v852_v62 = vadd.f32 %v2412_v50, %v851_v61  ;;  %v1745_v52 = vpop.f32.mrb[57].mxu0 }
 0x20b   :  { %v854_v63 = vpop.f32.mrb[58].mxu0 }
 0x20c   :  { %v855_v5 = vadd.f32 %v2412_v50, %v854_v63  ;;  %v1746_v54 = vpop.f32.mrb[59].mxu0  ;;  %v918_v0 = vmax.f32 %v852_v62, 0.0 }
 0x20e   :  { %v919_v1 = vmax.f32 %v855_v5, 0.0 }
 0x210   :  { %v942_v3 = vpack.c.bf16 %v919_v1, %v918_v0 }
 0x212   :  { %1836 = vmatmul.mubr.bf16.gmra.mrb[56].mxu1 %v942_v3 }
 0x213   :  { %v859_v34 = vpop.f32.mrb[60].mxu0  ;;  %1839 = vmatprep.mubr.msk.bf16.mxu1 %vm1955_vm0, %v1953_v4 }
 0x214   :  { %v860_v6 = vadd.f32 %v2412_v50, %v859_v34  ;;  %v1749_v7 = vpop.f32.mrb[61].mxu0 }
 0x215   :  { %v862_v8 = vpop.f32.mrb[62].mxu0 }
 0x216   :  { %v863_v9 = vadd.f32 %v2412_v50, %v862_v8  ;;  %v1750_v2 = vpop.f32.mrb[63].mxu0  ;;  %v920_v10 = vmax.f32 %v860_v6, 0.0 }
 0x218   :  { %v921_v11 = vmax.f32 %v863_v9, 0.0 }
 0x21a   :  { %v943_v12 = vpack.c.bf16 %v921_v11, %v920_v10 }
 0x21c   :  { %1840 = vmatmul.mubr.bf16.gmra.mrb[60].mxu1 %v943_v12 }
 0x21d   :  { %1843 = vmatprep.mubr.msk.bf16.mxu1 %vm1955_vm0, %v1953_v4 }
 0x221   :  { %v867_v13 = vpop.f32.mrb[64].mxu0 }
 0x222   :  { %v868_v41 = vadd.f32 %v2412_v50, %v867_v13  ;;  %v1753_v14 = vpop.f32.mrb[65].mxu0 }
 0x223   :  { %v870_v15 = vpop.f32.mrb[66].mxu0 }
 0x224   :  { %v871_v16 = vadd.f32 %v2412_v50, %v870_v15  ;;  %v1754_v17 = vpop.f32.mrb[67].mxu0  ;;  %v922_v18 = vmax.f32 %v868_v41, 0.0 }
 0x226   :  { %v923_v19 = vmax.f32 %v871_v16, 0.0 }
 0x228   :  { %v944_v20 = vpack.c.bf16 %v923_v19, %v922_v18 }
 0x22a   :  { %1844 = vmatmul.mubr.bf16.gmra.mrb[64].mxu1 %v944_v20 }
 0x22b   :  { %v875_v21 = vpop.f32.mrb[68].mxu0  ;;  %1847 = vmatprep.mubr.msk.bf16.mxu1 %vm1955_vm0, %v1953_v4 }
 0x22c   :  { %v876_v22 = vadd.f32 %v2412_v50, %v875_v21  ;;  %v1757_v23 = vpop.f32.mrb[69].mxu0 }
 0x22d   :  { %v878_v24 = vpop.f32.mrb[70].mxu0 }
 0x22e   :  { %v879_v25 = vadd.f32 %v2412_v50, %v878_v24  ;;  %v1758_v26 = vpop.f32.mrb[71].mxu0  ;;  %v924_v27 = vmax.f32 %v876_v22, 0.0 }
 0x230   :  { %v925_v28 = vmax.f32 %v879_v25, 0.0 }
 0x232   :  { %v945_v29 = vpack.c.bf16 %v925_v28, %v924_v27 }
 0x234   :  { %1848 = vmatmul.mubr.bf16.gmra.mrb[68].mxu1 %v945_v29 }
 0x235   :  { %1851 = vmatprep.mubr.msk.bf16.mxu1 %vm1955_vm0, %v1953_v4 }
 0x239   :  { %v883_v30 = vpop.f32.mrb[72].mxu0 }
 0x23a   :  { %v884_v31 = vadd.f32 %v2412_v50, %v883_v30  ;;  %v1761_v32 = vpop.f32.mrb[73].mxu0 }
 0x23b   :  { %v886_v33 = vpop.f32.mrb[74].mxu0 }
 0x23c   :  { %v887_v35 = vadd.f32 %v2412_v50, %v886_v33  ;;  %v1762_v36 = vpop.f32.mrb[75].mxu0  ;;  %v926_v38 = vmax.f32 %v884_v31, 0.0 }
 0x23e   :  { %v927_v37 = vmax.f32 %v887_v35, 0.0 }
 0x240   :  { %v946_v39 = vpack.c.bf16 %v927_v37, %v926_v38 }
 0x242   :  { %1852 = vmatmul.mubr.bf16.gmra.mrb[72].mxu1 %v946_v39 }
 0x244   :  { %v1052_v42 = vpop.f32.mrb[0].mxu1 }
 0x245   :  { %v1781_v43 = vpop.f32.mrb[1].mxu1  ;;  %v1053_v44 = vadd.f32 %v2491_v40, %v1052_v42 }
 0x246   :  { %v1055_v4 = vpop.f32.mrb[2].mxu1 }
 0x247   :  { %v1056_v45 = vadd.f32 %v2491_v40, %v1055_v4  ;;  %v1782_v46 = vpop.f32.mrb[3].mxu1 }
 0x249   :  { %v1507_v47 = vpack.c.bf16 %v1056_v45, %v1053_v44 }
 0x24b   :  { %1508 = vst [vmem:[#allocation2] sm:$0xff] %v1507_v47  }
 0x24c   :  { %v1060_v50 = vpop.f32.mrb[4].mxu1 }
 0x24d   :  { %v1785_v48 = vpop.f32.mrb[5].mxu1  ;;  %v1061_v51 = vadd.f32 %v2491_v40, %v1060_v50 }
 0x24e   :  { %v1063_v49 = vpop.f32.mrb[6].mxu1 }
 0x24f   :  { %v1064_v53 = vadd.f32 %v2491_v40, %v1063_v49  ;;  %v1786_v55 = vpop.f32.mrb[7].mxu1 }
 0x251   :  { %v1512_v56 = vpack.c.bf16 %v1064_v53, %v1061_v51 }
 0x253   :  { %1599 = vst [vmem:[#allocation2 + $0x8] sm:$0xff] %v1512_v56  }
 0x255   :  { %v1068_v57 = vpop.f32.mrb[8].mxu1 }
 0x256   :  { %v1789_v58 = vpop.f32.mrb[9].mxu1  ;;  %v1069_v60 = vadd.f32 %v2491_v40, %v1068_v57 }
 0x257   :  { %v1071_v59 = vpop.f32.mrb[10].mxu1 }
 0x258   :  { %v1072_v61 = vadd.f32 %v2491_v40, %v1071_v59  ;;  %v1790_v62 = vpop.f32.mrb[11].mxu1 }
 0x25a   :  { %v1517_v52 = vpack.c.bf16 %v1072_v61, %v1069_v60 }
 0x25c   :  { %1600 = vst [vmem:[#allocation2 + $0x10] sm:$0xff] %v1517_v52  }
 0x25f   :  { %v1076_v63 = vpop.f32.mrb[12].mxu1 }
 0x260   :  { %v1793_v5 = vpop.f32.mrb[13].mxu1  ;;  %v1077_v0 = vadd.f32 %v2491_v40, %v1076_v63 }
 0x261   :  { %v1079_v54 = vpop.f32.mrb[14].mxu1 }
 0x262   :  { %v1080_v1 = vadd.f32 %v2491_v40, %v1079_v54  ;;  %v1794_v3 = vpop.f32.mrb[15].mxu1 }
 0x264   :  { %v1522_v34 = vpack.c.bf16 %v1080_v1, %v1077_v0 }
 0x266   :  { %1601 = vst [vmem:[#allocation2 + $0x18] sm:$0xff] %v1522_v34  }
 0x26d   :  { %v1084_v6 = vpop.f32.mrb[16].mxu1 }
 0x26e   :  { %v1797_v7 = vpop.f32.mrb[17].mxu1  ;;  %v1085_v9 = vadd.f32 %v2491_v40, %v1084_v6 }
 0x26f   :  { %v1087_v8 = vpop.f32.mrb[18].mxu1 }
 0x270   :  { %v1088_v2 = vadd.f32 %v2491_v40, %v1087_v8  ;;  %v1798_v10 = vpop.f32.mrb[19].mxu1 }
 0x272   :  { %v1527_v11 = vpack.c.bf16 %v1088_v2, %v1085_v9 }
 0x274   :  { %1602 = vst [vmem:[#allocation2 + $0x20] sm:$0xff] %v1527_v11  }
 0x277   :  { %v1092_v12 = vpop.f32.mrb[20].mxu1 }
 0x278   :  { %v1801_v13 = vpop.f32.mrb[21].mxu1  ;;  %v1093_v14 = vadd.f32 %v2491_v40, %v1092_v12 }
 0x279   :  { %v1095_v41 = vpop.f32.mrb[22].mxu1 }
 0x27a   :  { %v1096_v15 = vadd.f32 %v2491_v40, %v1095_v41  ;;  %v1802_v16 = vpop.f32.mrb[23].mxu1 }
 0x27c   :  { %v1532_v17 = vpack.c.bf16 %v1096_v15, %v1093_v14 }
 0x27e   :  { %1603 = vst [vmem:[#allocation2 + $0x28] sm:$0xff] %v1532_v17  }
 0x285   :  { %v1100_v18 = vpop.f32.mrb[24].mxu1 }
 0x286   :  { %v1805_v19 = vpop.f32.mrb[25].mxu1  ;;  %v1101_v21 = vadd.f32 %v2491_v40, %v1100_v18 }
 0x287   :  { %v1103_v20 = vpop.f32.mrb[26].mxu1 }
 0x288   :  { %v1104_v22 = vadd.f32 %v2491_v40, %v1103_v20  ;;  %v1806_v23 = vpop.f32.mrb[27].mxu1 }
 0x28a   :  { %v1537_v24 = vpack.c.bf16 %v1104_v22, %v1101_v21 }
 0x28c   :  { %1604 = vst [vmem:[#allocation2 + $0x30] sm:$0xff] %v1537_v24  }
 0x28f   :  { %v1108_v25 = vpop.f32.mrb[28].mxu1 }
 0x290   :  { %v1809_v26 = vpop.f32.mrb[29].mxu1  ;;  %v1109_v28 = vadd.f32 %v2491_v40, %v1108_v25 }
 0x291   :  { %v1111_v27 = vpop.f32.mrb[30].mxu1 }
 0x292   :  { %v1112_v29 = vadd.f32 %v2491_v40, %v1111_v27  ;;  %v1810_v30 = vpop.f32.mrb[31].mxu1 }
 0x294   :  { %v1542_v31 = vpack.c.bf16 %v1112_v29, %v1109_v28 }
 0x296   :  { %1605 = vst [vmem:[#allocation2 + $0x38] sm:$0xff] %v1542_v31  }
 0x29d   :  { %v1116_v32 = vpop.f32.mrb[32].mxu1 }
 0x29e   :  { %v1813_v33 = vpop.f32.mrb[33].mxu1  ;;  %v1117_v36 = vadd.f32 %v2491_v40, %v1116_v32 }
 0x29f   :  { %v1119_v35 = vpop.f32.mrb[34].mxu1 }
 0x2a0   :  { %v1120_v38 = vadd.f32 %v2491_v40, %v1119_v35  ;;  %v1814_v37 = vpop.f32.mrb[35].mxu1 }
 0x2a2   :  { %v1547_v39 = vpack.c.bf16 %v1120_v38, %v1117_v36 }
 0x2a4   :  { %1606 = vst [vmem:[#allocation2 + $0x40] sm:$0xff] %v1547_v39  }
 0x2a7   :  { %v1124_v42 = vpop.f32.mrb[36].mxu1 }
 0x2a8   :  { %v1817_v43 = vpop.f32.mrb[37].mxu1  ;;  %v1125_v44 = vadd.f32 %v2491_v40, %v1124_v42 }
 0x2a9   :  { %v1127_v4 = vpop.f32.mrb[38].mxu1 }
 0x2aa   :  { %v1128_v45 = vadd.f32 %v2491_v40, %v1127_v4  ;;  %v1818_v46 = vpop.f32.mrb[39].mxu1 }
 0x2ac   :  { %v1552_v47 = vpack.c.bf16 %v1128_v45, %v1125_v44 }
 0x2ae   :  { %1607 = vst [vmem:[#allocation2 + $0x48] sm:$0xff] %v1552_v47  }
 0x2b5   :  { %v1132_v50 = vpop.f32.mrb[40].mxu1 }
 0x2b6   :  { %v1821_v48 = vpop.f32.mrb[41].mxu1  ;;  %v1133_v51 = vadd.f32 %v2491_v40, %v1132_v50 }
 0x2b7   :  { %v1135_v49 = vpop.f32.mrb[42].mxu1 }
 0x2b8   :  { %v1136_v53 = vadd.f32 %v2491_v40, %v1135_v49  ;;  %v1822_v55 = vpop.f32.mrb[43].mxu1 }
 0x2ba   :  { %v1557_v56 = vpack.c.bf16 %v1136_v53, %v1133_v51 }
 0x2bc   :  { %1608 = vst [vmem:[#allocation2 + $0x50] sm:$0xff] %v1557_v56  }
 0x2bf   :  { %v1140_v57 = vpop.f32.mrb[44].mxu1 }
 0x2c0   :  { %v1825_v58 = vpop.f32.mrb[45].mxu1  ;;  %v1141_v60 = vadd.f32 %v2491_v40, %v1140_v57 }
 0x2c1   :  { %v1143_v59 = vpop.f32.mrb[46].mxu1 }
 0x2c2   :  { %v1144_v61 = vadd.f32 %v2491_v40, %v1143_v59  ;;  %v1826_v62 = vpop.f32.mrb[47].mxu1 }
 0x2c4   :  { %v1562_v52 = vpack.c.bf16 %v1144_v61, %v1141_v60 }
 0x2c6   :  { %1609 = vst [vmem:[#allocation2 + $0x58] sm:$0xff] %v1562_v52  }
 0x2cd   :  { %v1148_v63 = vpop.f32.mrb[48].mxu1 }
 0x2ce   :  { %v1829_v5 = vpop.f32.mrb[49].mxu1  ;;  %v1149_v0 = vadd.f32 %v2491_v40, %v1148_v63 }
 0x2cf   :  { %v1151_v54 = vpop.f32.mrb[50].mxu1 }
 0x2d0   :  { %v1152_v1 = vadd.f32 %v2491_v40, %v1151_v54  ;;  %v1830_v3 = vpop.f32.mrb[51].mxu1 }
 0x2d2   :  { %v1567_v34 = vpack.c.bf16 %v1152_v1, %v1149_v0 }
 0x2d4   :  { %1610 = vst [vmem:[#allocation2 + $0x60] sm:$0xff] %v1567_v34  }
 0x2d7   :  { %v1156_v6 = vpop.f32.mrb[52].mxu1 }
 0x2d8   :  { %v1833_v7 = vpop.f32.mrb[53].mxu1  ;;  %v1157_v9 = vadd.f32 %v2491_v40, %v1156_v6 }
 0x2d9   :  { %v1159_v8 = vpop.f32.mrb[54].mxu1 }
 0x2da   :  { %v1160_v2 = vadd.f32 %v2491_v40, %v1159_v8  ;;  %v1834_v10 = vpop.f32.mrb[55].mxu1 }
 0x2dc   :  { %v1572_v11 = vpack.c.bf16 %v1160_v2, %v1157_v9 }
 0x2de   :  { %1611 = vst [vmem:[#allocation2 + $0x68] sm:$0xff] %v1572_v11  }
 0x2e5   :  { %v1164_v12 = vpop.f32.mrb[56].mxu1 }
 0x2e6   :  { %v1837_v13 = vpop.f32.mrb[57].mxu1  ;;  %v1165_v14 = vadd.f32 %v2491_v40, %v1164_v12 }
 0x2e7   :  { %v1167_v41 = vpop.f32.mrb[58].mxu1 }
 0x2e8   :  { %v1168_v15 = vadd.f32 %v2491_v40, %v1167_v41  ;;  %v1838_v16 = vpop.f32.mrb[59].mxu1 }
 0x2ea   :  { %v1577_v17 = vpack.c.bf16 %v1168_v15, %v1165_v14 }
 0x2ec   :  { %1612 = vst [vmem:[#allocation2 + $0x70] sm:$0xff] %v1577_v17  }
 0x2ef   :  { %v1172_v18 = vpop.f32.mrb[60].mxu1 }
 0x2f0   :  { %v1841_v19 = vpop.f32.mrb[61].mxu1  ;;  %v1173_v21 = vadd.f32 %v2491_v40, %v1172_v18 }
 0x2f1   :  { %v1175_v20 = vpop.f32.mrb[62].mxu1 }
 0x2f2   :  { %v1176_v22 = vadd.f32 %v2491_v40, %v1175_v20  ;;  %v1842_v23 = vpop.f32.mrb[63].mxu1 }
 0x2f4   :  { %v1582_v24 = vpack.c.bf16 %v1176_v22, %v1173_v21 }
 0x2f6   :  { %1613 = vst [vmem:[#allocation2 + $0x78] sm:$0xff] %v1582_v24  }
 0x2fd   :  { %v1180_v25 = vpop.f32.mrb[64].mxu1 }
 0x2fe   :  { %v1845_v26 = vpop.f32.mrb[65].mxu1  ;;  %v1181_v28 = vadd.f32 %v2491_v40, %v1180_v25 }
 0x2ff   :  { %v1183_v27 = vpop.f32.mrb[66].mxu1 }
 0x300   :  { %v1184_v29 = vadd.f32 %v2491_v40, %v1183_v27  ;;  %v1846_v30 = vpop.f32.mrb[67].mxu1 }
 0x302   :  { %v1587_v31 = vpack.c.bf16 %v1184_v29, %v1181_v28 }
 0x304   :  { %1614 = vst [vmem:[#allocation2 + $0x80] sm:$0xff] %v1587_v31  }
 0x307   :  { %v1188_v32 = vpop.f32.mrb[68].mxu1 }
 0x308   :  { %v1849_v33 = vpop.f32.mrb[69].mxu1  ;;  %v1189_v36 = vadd.f32 %v2491_v40, %v1188_v32 }
 0x309   :  { %v1191_v35 = vpop.f32.mrb[70].mxu1 }
 0x30a   :  { %v1192_v38 = vadd.f32 %v2491_v40, %v1191_v35  ;;  %v1850_v37 = vpop.f32.mrb[71].mxu1 }
 0x30c   :  { %v1592_v39 = vpack.c.bf16 %v1192_v38, %v1189_v36 }
 0x30e   :  { %1615 = vst [vmem:[#allocation2 + $0x88] sm:$0xff] %v1592_v39  }
 0x315   :  { %v1196_v42 = vpop.f32.mrb[72].mxu1 }
 0x316   :  { %v1853_v43 = vpop.f32.mrb[73].mxu1  ;;  %v1197_v44 = vadd.f32 %v2491_v40, %v1196_v42 }
 0x317   :  { %v1199_v4 = vpop.f32.mrb[74].mxu1 }
 0x318   :  { %v1200_v45 = vadd.f32 %v2491_v40, %v1199_v4  ;;  %v1854_v46 = vpop.f32.mrb[75].mxu1 }
 0x31a   :  { %v1597_v47 = vpack.c.bf16 %v1200_v45, %v1197_v44 }
 0x31c   :  { %1616 = vst [vmem:[#allocation2 + $0x90] sm:$0xff] %v1597_v47  }
 0x31d   :  { %1939 = shalt.err (!%p1936_p4)
}
 0x31e   :  { %s1940_s18 = scalar_lea.hbm %s2550_s7, 2432 }
 0x31f   :  { %p1941_p5 = scmp.ne.s32.totalorder %s2550_s7, %s1940_s18  ;;  %p1944_p6 = scmp.lt.u32.totalorder %s1940_s18, %s2550_s7 }
 0x321   :  { %p1946_p7 = pnand %p1944_p6, %p1941_p5 }
 0x323   :  { %1949 = shalt.err (!%p1946_p7)
}
 0x324   :  { %s1957_s23 = smov 64   ;;  %s1958_s24 = smov 4  }
 0x325   :  { %1404 = dma.vmem_to_hbm [thread:$0]  %s1399_s15, 2432, %s2550_s7, [#allocation3], %s1957_s23, %s1957_s23, %s1958_s24  }
 0x326   :  { %1950 = dma.done.wait [#allocation3], 2432  }
 0x327   :  { %1951 = vsyncadd [#allocation3], 4294964864 }
 0x328   :  { %1408 = vsyncpa [#allocation3], 1 }

</bundles_post_ra>
